<compile_context>
chip_gen: v7x
topology: tpu7x:2x2x1
jax: 0.10.0
libtpu: 0.0.40
codegen_flags: <defaults>
</compile_context>

<pallas_src>
import jax
import jax.numpy as jnp
import numpy as np
from jax.experimental import pallas as pl
from jax.experimental.pallas import tpu as pltpu

# ----------------------------- configuration --------------------------------
PT_FEA_DIM = 16      # per-point input feature dim (stand-in for cylinder feats)
HIDDEN_DIM = 128     # dim_in of projection_head (fixed to 128 in the module)
PROJ_DIM = 64        # proj_dim of projection_head
NUM_CLASSES = 20
MEMORY_SIZE = 2500
CONTRAST_DIM = 64
LANE_PAD = 128       # lane-dense output width (logits 20 -> 128, proj 64 -> 128)
TILE_N = 512         # row tile for the point dimension (sweepable 512..2048)


# ------------------------------ fused Pallas kernel ---------------------------
def _fused_kernel(x_ref, gw_ref, gb_ref, w1_ref, b1_ref, w2_ref, b2_ref,
                  pw_ref, pb_ref, logit_ref, proj_ref):
    """gen -> seg -> projection_head for one TILE_N row block, all in VMEM."""
    bf = jnp.bfloat16

    # cylinder_3d_generator stand-in: Linear(PT_FEA_DIM, 128) + ReLU
    h0 = jnp.dot(x_ref[...], gw_ref[...], preferred_element_type=jnp.float32)
    h0 = jnp.maximum(h0 + gb_ref[...], 0.0)                      # f32 epilogue

    # cylinder_3d_spconv_seg stand-in:
    #   features = ReLU(Linear(128, 128)); logits = Linear(128, 20 -> padded 128)
    h1 = jnp.dot(h0.astype(bf), w1_ref[...], preferred_element_type=jnp.float32)
    h1 = jnp.maximum(h1 + b1_ref[...], 0.0)                      # f32 epilogue
    h1b = h1.astype(bf)

    lg = jnp.dot(h1b, w2_ref[...], preferred_element_type=jnp.float32) + b2_ref[...]
    logit_ref[...] = lg.astype(logit_ref.dtype)

    # projection_head: Linear(128, 64 -> padded 128) + F.normalize(p=2, dim=1).
    # Padded output columns have exactly-zero weights & bias, so they contribute
    # 0 to the sum of squares and the L2 norm of the real 64 channels is exact.
    p = jnp.dot(h1b, pw_ref[...], preferred_element_type=jnp.float32) + pb_ref[...]
    ssq = jnp.sum(p * p, axis=-1, keepdims=True)
    inv = jax.lax.rsqrt(jnp.maximum(ssq, 1e-24))                 # == 1/max(||p||,1e-12)
    proj_ref[...] = (p * inv).astype(proj_ref.dtype)


# ------------------------------ pallas_call glue ------------------------------
def _fused_forward_call(packed, pt_fea, n_valid):
    """Run the fused kernel row-tiled over all points; returns (logits, proj)."""
    n = pt_fea.shape[0]
    n_pad = pl.cdiv(n, TILE_N) * TILE_N
    if n_pad != n:
        pt_fea = jnp.pad(pt_fea, ((0, n_pad - n), (0, 0)))
    x = pt_fea.astype(jnp.bfloat16)                               # halve HBM bytes

    weight_args = (
        packed["gen_w"], packed["gen_b"],
        packed["seg_w1"], packed["seg_b1"],
        packed["seg_w2p"], packed["seg_b2p"],
        packed["proj_wp"], packed["proj_bp"],
    )

    in_specs = [pl.BlockSpec((TILE_N, PT_FEA_DIM), lambda i: (i, 0))]
    for wb in weight_args:
        # bind rank per-iteration (avoid late-binding closure bug)
        in_specs.append(pl.BlockSpec(wb.shape, lambda i, r=wb.ndim: (0,) * r))

    out_shape = (jax.ShapeDtypeStruct((n_pad, LANE_PAD), jnp.float32),
                 jax.ShapeDtypeStruct((n_pad, LANE_PAD), jnp.float32))
    out_specs = (pl.BlockSpec((TILE_N, LANE_PAD), lambda i: (i, 0)),
                 pl.BlockSpec((TILE_N, LANE_PAD), lambda i: (i, 0)))

    logits_p, proj_p = pl.pallas_call(
        _fused_kernel,
        out_shape=out_shape,
        grid_spec=pltpu.PrefetchScalarGridSpec(
            num_scalar_prefetch=0,
            grid=(n_pad // TILE_N,),
            in_specs=in_specs,
            out_specs=out_specs,
        ),
        compiler_params=pltpu.CompilerParams(
            dimension_semantics=("parallel",)),
    )(x, *weight_args)

    return logits_p[:n_valid, :NUM_CLASSES], proj_p[:n_valid, :PROJ_DIM]


# ------------------------------- parameter init -------------------------------
def init_params(key):
    ks = jax.random.split(key, 8)

    def lin(k, fan_in, fan_out):
        kw, kb = jax.random.split(k)
        bound = 1.0 / np.sqrt(fan_in)
        w = jax.random.uniform(kw, (fan_in, fan_out), jnp.float32, -bound, bound)
        b = jax.random.uniform(kb, (1, fan_out), jnp.float32, -bound, bound)
        return w, b

    params = {}
    params["gen_w"], params["gen_b"] = lin(ks[0], PT_FEA_DIM, HIDDEN_DIM)
    params["seg_w1"], params["seg_b1"] = lin(ks[1], HIDDEN_DIM, HIDDEN_DIM)
    params["seg_w2"], params["seg_b2"] = lin(ks[2], HIDDEN_DIM, NUM_CLASSES)
    params["proj_w"], params["proj_b"] = lin(ks[3], HIDDEN_DIM, PROJ_DIM)

    # memory-bank buffers (with_mem=True); init-time only, plain JAX is fine.
    sq = jax.random.normal(ks[4], (NUM_CLASSES, MEMORY_SIZE, CONTRAST_DIM))
    sq = sq / jnp.maximum(jnp.linalg.norm(sq, axis=2, keepdims=True), 1e-12)
    pq = jax.random.normal(ks[5], (NUM_CLASSES, MEMORY_SIZE, CONTRAST_DIM))
    pq = pq / jnp.maximum(jnp.linalg.norm(pq, axis=2, keepdims=True), 1e-12)
    params["segment_queue"] = sq
    params["segment_queue_ptr"] = jnp.zeros((NUM_CLASSES,), jnp.int32)
    params["pixel_queue"] = pq
    params["pixel_queue_ptr"] = jnp.zeros((NUM_CLASSES,), jnp.int32)
    return params


def pack_params(params):
    """One-time prep: bf16 matmul weights, f32 biases, lane-dense (128) padding."""
    bf = jnp.bfloat16

    def pad_w(w):
        return jnp.pad(w, ((0, 0), (0, LANE_PAD - w.shape[1]))).astype(bf)

    def pad_b(b):
        return jnp.pad(b, ((0, 0), (0, LANE_PAD - b.shape[1]))).astype(jnp.float32)

    return {
        "gen_w": params["gen_w"].astype(bf),
        "gen_b": params["gen_b"].astype(jnp.float32),
        "seg_w1": params["seg_w1"].astype(bf),
        "seg_b1": params["seg_b1"].astype(jnp.float32),
        "seg_w2p": pad_w(params["seg_w2"]),
        "seg_b2p": pad_b(params["seg_b2"]),
        "proj_wp": pad_w(params["proj_w"]),
        "proj_bp": pad_b(params["proj_b"]),
    }


# --------------------------------- forward -----------------------------------
def cylinder_asym_forward(params, train_pt_fea_ten, train_vox_ten, batch_size,
                          with_feature=False, with_coords=False):
    # --- cylinder_3d_generator coords (plain JAX metadata) -------------------
    pt_fea = jnp.concatenate(train_pt_fea_ten, axis=0)            # [N, PT_FEA_DIM]
    batch_idx = jnp.concatenate(
        [jnp.full((f.shape[0], 1), b, jnp.int32)
         for b, f in enumerate(train_pt_fea_ten)], axis=0)
    coords = jnp.concatenate(
        [batch_idx, jnp.concatenate(train_vox_ten, axis=0).astype(jnp.int32)],
        axis=1)                                                    # [N, 4]

    packed = pack_params(params)
    n = pt_fea.shape[0]
    # fused gen -> seg -> proj; only logits + proj_feat ever hit HBM
    logits, proj_feat = _fused_forward_call(packed, pt_fea, n)

    if with_feature:
        if with_coords:
            return logits, proj_feat, coords
        return logits, proj_feat
    return logits


# -------------------------------- reference ----------------------------------
def _reference(params, pt_fea):
    bf = jnp.bfloat16

    def mm(a, w):
        return jnp.dot(a.astype(bf), w.astype(bf),
                       preferred_element_type=jnp.float32)

    f3d = jnp.maximum(mm(pt_fea, params["gen_w"]) + params["gen_b"], 0.0)
    feat = jnp.maximum(mm(f3d, params["seg_w1"]) + params["seg_b1"], 0.0)
    logits = mm(feat, params["seg_w2"]) + params["seg_b2"]
    y = mm(feat, params["proj_w"]) + params["proj_b"]
    y = y / jnp.maximum(jnp.linalg.norm(y, axis=1, keepdims=True), 1e-12)
    return logits, y


# ----------------------------------- main -------------------------------------
if __name__ == "__main__":
    key = jax.random.PRNGKey(0)
    kp, kx0, kx1, kv = jax.random.split(key, 4)
    params = init_params(kp)

    batch_size = 2
    pts_per_sample = 128      # N total = 256 (NOT a multiple of TILE_N: tests padding path)
    sparse_shape = (480, 360, 32)

    train_pt_fea_ten = [
        jax.random.normal(kx0, (pts_per_sample, PT_FEA_DIM), jnp.float32),
        jax.random.normal(kx1, (pts_per_sample, PT_FEA_DIM), jnp.float32),
    ]
    vox = jax.random.randint(
        kv, (batch_size * pts_per_sample, 3), 0,
        jnp.array(sparse_shape, jnp.int32), jnp.int32)
    train_vox_ten = [vox[:pts_per_sample], vox[pts_per_sample:]]

    logits, proj_feat, coords = cylinder_asym_forward(
        params, train_pt_fea_ten, train_vox_ten, batch_size,
        with_feature=True, with_coords=True)
    jax.block_until_ready((logits, proj_feat, coords))

    # correctness check against a plain-JAX (bf16-matmul, f32-accum) reference
    ref_logits, ref_proj = _reference(
        params, jnp.concatenate(train_pt_fea_ten, axis=0))
    np.testing.assert_allclose(np.asarray(logits), np.asarray(ref_logits),
                               rtol=2e-2, atol=2e-2)
    np.testing.assert_allclose(np.asarray(proj_feat), np.asarray(ref_proj),
                               rtol=2e-2, atol=2e-2)
    np.testing.assert_allclose(
        np.linalg.norm(np.asarray(proj_feat), axis=1),
        np.ones(proj_feat.shape[0]), rtol=1e-3, atol=1e-3)
    assert logits.shape == (batch_size * pts_per_sample, NUM_CLASSES)
    assert proj_feat.shape == (batch_size * pts_per_sample, PROJ_DIM)
    assert coords.shape == (batch_size * pts_per_sample, 4)

    # with_feature=False path returns only logits (same fused kernel)
    logits_only = cylinder_asym_forward(
        params, train_pt_fea_ten, train_vox_ten, batch_size)
    jax.block_until_ready(logits_only)
    assert logits_only.shape == (batch_size * pts_per_sample, NUM_CLASSES)

    print("KERNEL_OK")
</pallas_src>

<mosaic_0001>
module attributes {stable_mosaic.version = 11 : i64} {
  func.func @_fused_kernel(%arg0: i32, %arg1: memref<512x16xbf16, #tpu.memory_space<vmem>>, %arg2: memref<16x128xbf16, #tpu.memory_space<vmem>>, %arg3: memref<1x128xf32, #tpu.memory_space<vmem>>, %arg4: memref<128x128xbf16, #tpu.memory_space<vmem>>, %arg5: memref<1x128xf32, #tpu.memory_space<vmem>>, %arg6: memref<128x128xbf16, #tpu.memory_space<vmem>>, %arg7: memref<1x128xf32, #tpu.memory_space<vmem>>, %arg8: memref<128x128xbf16, #tpu.memory_space<vmem>>, %arg9: memref<1x128xf32, #tpu.memory_space<vmem>>, %arg10: memref<512x128xf32, #tpu.memory_space<vmem>>, %arg11: memref<512x128xf32, #tpu.memory_space<vmem>>) attributes {dimension_semantics = [#tpu.dimension_semantics<parallel>], iteration_bounds = array<i64: 1>, scalar_prefetch = 0 : i64, scratch_operands = 0 : i64, tpu.core_type = #tpu.core_type<tc>, window_params = [{transform_indices = @transform_0, window_bounds = array<i64: 512, 16>}, {pipeline_mode = #tpu.pipeline_mode<synchronous>, transform_indices = @transform_1, window_bounds = array<i64: 16, 128>}, {pipeline_mode = #tpu.pipeline_mode<synchronous>, transform_indices = @transform_2, window_bounds = array<i64: 1, 128>}, {pipeline_mode = #tpu.pipeline_mode<synchronous>, transform_indices = @transform_3, window_bounds = array<i64: 128, 128>}, {pipeline_mode = #tpu.pipeline_mode<synchronous>, transform_indices = @transform_4, window_bounds = array<i64: 1, 128>}, {pipeline_mode = #tpu.pipeline_mode<synchronous>, transform_indices = @transform_5, window_bounds = array<i64: 128, 128>}, {pipeline_mode = #tpu.pipeline_mode<synchronous>, transform_indices = @transform_6, window_bounds = array<i64: 1, 128>}, {pipeline_mode = #tpu.pipeline_mode<synchronous>, transform_indices = @transform_7, window_bounds = array<i64: 128, 128>}, {pipeline_mode = #tpu.pipeline_mode<synchronous>, transform_indices = @transform_8, window_bounds = array<i64: 1, 128>}, {transform_indices = @transform_9, window_bounds = array<i64: 512, 128>}, {transform_indices = @transform_10, window_bounds = array<i64: 512, 128>}]} {
    %c0 = arith.constant 0 : index
    %c0_0 = arith.constant 0 : index
    %0 = vector.load %arg1[%c0, %c0_0] : memref<512x16xbf16, #tpu.memory_space<vmem>>, vector<512x16xbf16>
    %c0_1 = arith.constant 0 : index
    %c0_2 = arith.constant 0 : index
    %1 = vector.load %arg2[%c0_1, %c0_2] : memref<16x128xbf16, #tpu.memory_space<vmem>>, vector<16x128xbf16>
    %cst = arith.constant dense<0.000000e+00> : vector<512x128xf32>
    %2 = tpu.matmul %0, %1, %cst {dimension_numbers = #tpu.dot_dimension_numbers<[1], [0], [0], [1], [0, 0, 1, 1], [], []>} : vector<512x16xbf16>, vector<16x128xbf16>, vector<512x128xf32> -> vector<512x128xf32>
    %c0_3 = arith.constant 0 : index
    %c0_4 = arith.constant 0 : index
    %3 = vector.load %arg3[%c0_3, %c0_4] : memref<1x128xf32, #tpu.memory_space<vmem>>, vector<1x128xf32>
    %4 = vector.broadcast %3 : vector<1x128xf32> to vector<512x128xf32>
    %5 = arith.addf %2, %4 : vector<512x128xf32>
    %cst_5 = arith.constant 0.000000e+00 : f32
    %6 = vector.broadcast %cst_5 : f32 to vector<512x128xf32>
    %7 = arith.maximumf %5, %6 : vector<512x128xf32>
    %8 = arith.truncf %7 : vector<512x128xf32> to vector<512x128xbf16>
    %c0_6 = arith.constant 0 : index
    %c0_7 = arith.constant 0 : index
    %9 = vector.load %arg4[%c0_6, %c0_7] : memref<128x128xbf16, #tpu.memory_space<vmem>>, vector<128x128xbf16>
    %cst_8 = arith.constant dense<0.000000e+00> : vector<512x128xf32>
    %10 = tpu.matmul %8, %9, %cst_8 {dimension_numbers = #tpu.dot_dimension_numbers<[1], [0], [0], [1], [0, 0, 1, 1], [], []>} : vector<512x128xbf16>, vector<128x128xbf16>, vector<512x128xf32> -> vector<512x128xf32>
    %c0_9 = arith.constant 0 : index
    %c0_10 = arith.constant 0 : index
    %11 = vector.load %arg5[%c0_9, %c0_10] : memref<1x128xf32, #tpu.memory_space<vmem>>, vector<1x128xf32>
    %12 = vector.broadcast %11 : vector<1x128xf32> to vector<512x128xf32>
    %13 = arith.addf %10, %12 : vector<512x128xf32>
    %cst_11 = arith.constant 0.000000e+00 : f32
    %14 = vector.broadcast %cst_11 : f32 to vector<512x128xf32>
    %15 = arith.maximumf %13, %14 : vector<512x128xf32>
    %16 = arith.truncf %15 : vector<512x128xf32> to vector<512x128xbf16>
    %c0_12 = arith.constant 0 : index
    %c0_13 = arith.constant 0 : index
    %17 = vector.load %arg6[%c0_12, %c0_13] : memref<128x128xbf16, #tpu.memory_space<vmem>>, vector<128x128xbf16>
    %cst_14 = arith.constant dense<0.000000e+00> : vector<512x128xf32>
    %18 = tpu.matmul %16, %17, %cst_14 {dimension_numbers = #tpu.dot_dimension_numbers<[1], [0], [0], [1], [0, 0, 1, 1], [], []>} : vector<512x128xbf16>, vector<128x128xbf16>, vector<512x128xf32> -> vector<512x128xf32>
    %c0_15 = arith.constant 0 : index
    %c0_16 = arith.constant 0 : index
    %19 = vector.load %arg7[%c0_15, %c0_16] : memref<1x128xf32, #tpu.memory_space<vmem>>, vector<1x128xf32>
    %20 = vector.broadcast %19 : vector<1x128xf32> to vector<512x128xf32>
    %21 = arith.addf %18, %20 : vector<512x128xf32>
    %c0_17 = arith.constant 0 : index
    %c0_18 = arith.constant 0 : index
    %22 = vector.load %arg10[%c0_17, %c0_18] : memref<512x128xf32, #tpu.memory_space<vmem>>, vector<512x128xf32>
    tpu.vector_store %arg10[%c0_17, %c0_18], %21 {strides = array<i32>} : memref<512x128xf32, #tpu.memory_space<vmem>>, vector<512x128xf32>,
    %c0_19 = arith.constant 0 : index
    %c0_20 = arith.constant 0 : index
    %23 = vector.load %arg8[%c0_19, %c0_20] : memref<128x128xbf16, #tpu.memory_space<vmem>>, vector<128x128xbf16>
    %cst_21 = arith.constant dense<0.000000e+00> : vector<512x128xf32>
    %24 = tpu.matmul %16, %23, %cst_21 {dimension_numbers = #tpu.dot_dimension_numbers<[1], [0], [0], [1], [0, 0, 1, 1], [], []>} : vector<512x128xbf16>, vector<128x128xbf16>, vector<512x128xf32> -> vector<512x128xf32>
    %c0_22 = arith.constant 0 : index
    %c0_23 = arith.constant 0 : index
    %25 = vector.load %arg9[%c0_22, %c0_23] : memref<1x128xf32, #tpu.memory_space<vmem>>, vector<1x128xf32>
    %26 = vector.broadcast %25 : vector<1x128xf32> to vector<512x128xf32>
    %27 = arith.addf %24, %26 : vector<512x128xf32>
    %28 = arith.mulf %27, %27 : vector<512x128xf32>
    %cst_24 = arith.constant dense<0.000000e+00> : vector<512xf32>
    %29 = vector.multi_reduction <add>, %28, %cst_24 [1] : vector<512x128xf32> to vector<512xf32>
    %30 = vector.shape_cast %29 : vector<512xf32> to vector<512x1xf32>
    %cst_25 = arith.constant 1.000000e-24 : f32
    %31 = vector.broadcast %cst_25 : f32 to vector<512x1xf32>
    %32 = arith.maximumf %30, %31 : vector<512x1xf32>
    %33 = math.rsqrt %32 : vector<512x1xf32>
    %34 = vector.broadcast %33 : vector<512x1xf32> to vector<512x128xf32>
    %35 = arith.mulf %27, %34 : vector<512x128xf32>
    %c0_26 = arith.constant 0 : index
    %c0_27 = arith.constant 0 : index
    %36 = vector.load %arg11[%c0_26, %c0_27] : memref<512x128xf32, #tpu.memory_space<vmem>>, vector<512x128xf32>
    tpu.vector_store %arg11[%c0_26, %c0_27], %35 {strides = array<i32>} : memref<512x128xf32, #tpu.memory_space<vmem>>, vector<512x128xf32>,
    return
  }
  func.func @transform_0(%arg0: i32) -> (i32, i32) {
    %c0_i32 = arith.constant 0 : i32
    %c0_i32_0 = arith.constant 0 : i32
    return %arg0, %c0_i32 : i32, i32
  }
  func.func @transform_1(%arg0: i32) -> (i32, i32) {
    %c0_i32 = arith.constant 0 : i32
    %c0_i32_0 = arith.constant 0 : i32
    %c0_i32_1 = arith.constant 0 : i32
    return %c0_i32, %c0_i32_0 : i32, i32
  }
  func.func @transform_2(%arg0: i32) -> (i32, i32) {
    %c0_i32 = arith.constant 0 : i32
    %c0_i32_0 = arith.constant 0 : i32
    %c0_i32_1 = arith.constant 0 : i32
    return %c0_i32, %c0_i32_0 : i32, i32
  }
  func.func @transform_3(%arg0: i32) -> (i32, i32) {
    %c0_i32 = arith.constant 0 : i32
    %c0_i32_0 = arith.constant 0 : i32
    %c0_i32_1 = arith.constant 0 : i32
    return %c0_i32, %c0_i32_0 : i32, i32
  }
  func.func @transform_4(%arg0: i32) -> (i32, i32) {
    %c0_i32 = arith.constant 0 : i32
    %c0_i32_0 = arith.constant 0 : i32
    %c0_i32_1 = arith.constant 0 : i32
    return %c0_i32, %c0_i32_0 : i32, i32
  }
  func.func @transform_5(%arg0: i32) -> (i32, i32) {
    %c0_i32 = arith.constant 0 : i32
    %c0_i32_0 = arith.constant 0 : i32
    %c0_i32_1 = arith.constant 0 : i32
    return %c0_i32, %c0_i32_0 : i32, i32
  }
  func.func @transform_6(%arg0: i32) -> (i32, i32) {
    %c0_i32 = arith.constant 0 : i32
    %c0_i32_0 = arith.constant 0 : i32
    %c0_i32_1 = arith.constant 0 : i32
    return %c0_i32, %c0_i32_0 : i32, i32
  }
  func.func @transform_7(%arg0: i32) -> (i32, i32) {
    %c0_i32 = arith.constant 0 : i32
    %c0_i32_0 = arith.constant 0 : i32
    %c0_i32_1 = arith.constant 0 : i32
    return %c0_i32, %c0_i32_0 : i32, i32
  }
  func.func @transform_8(%arg0: i32) -> (i32, i32) {
    %c0_i32 = arith.constant 0 : i32
    %c0_i32_0 = arith.constant 0 : i32
    %c0_i32_1 = arith.constant 0 : i32
    return %c0_i32, %c0_i32_0 : i32, i32
  }
  func.func @transform_9(%arg0: i32) -> (i32, i32) {
    %c0_i32 = arith.constant 0 : i32
    %c0_i32_0 = arith.constant 0 : i32
    return %arg0, %c0_i32 : i32, i32
  }
  func.func @transform_10(%arg0: i32) -> (i32, i32) {
    %c0_i32 = arith.constant 0 : i32
    %c0_i32_0 = arith.constant 0 : i32
    return %arg0, %c0_i32 : i32, i32
  }
}

</mosaic_0001>

<bundles_post_ra>
// kernel: tpu_custom_call.1
= control target key start
LH: loop header
LB: loop body
LE: loop exit
PB: predicated region body
PF: predicated region fallthrough
CT: control target
= control target key end

     0   :  { %16 = vsyncpa [#allocation3], 0  ;;  %vm276_vm0 = vcmask 130048   ;;  %s4227_s0 = inlined_call_operand.vmem [shape: bf16[512,16], index: 0, kind: input, shape index: {}]   ;;  %s4228_s1 = inlined_call_operand.vmem [shape: bf16[16,128], index: 1, kind: input, shape index: {}]   ;;  %s4229_s2 = inlined_call_operand.vmem [shape: f32[1,128], index: 2, kind: input, shape index: {}]   ;;  %s4230_s3 = inlined_call_operand.vmem [shape: bf16[128,128], index: 3, kind: input, shape index: {}]   ;;  %s4231_s4 = inlined_call_operand.vmem [shape: f32[1,128], index: 4, kind: input, shape index: {}]   ;;  %s4232_s5 = inlined_call_operand.vmem [shape: bf16[128,128], index: 5, kind: input, shape index: {}]   ;;  %s4233_s6 = inlined_call_operand.vmem [shape: f32[1,128], index: 6, kind: input, shape index: {}]   ;;  %s4234_s7 = inlined_call_operand.vmem [shape: bf16[128,128], index: 7, kind: input, shape index: {}]   ;;  %s4235_s8 = inlined_call_operand.vmem [shape: f32[1,128], index: 8, kind: input, shape index: {}]   ;;  %s4236_s9 = inlined_call_operand.hbm [shape: f32[512,128], index: 9, kind: output, shape index: {0}]   ;;  %s4237_s10 = inlined_call_operand.hbm [shape: f32[512,128], index: 10, kind: output, shape index: {1}]  }
   0x1   :  { %v3050_v0 = vld [vmem:[%s4228_s1] sm:$0xff]   ;;  %v3052_v2 = vld [vmem:[%s4227_s0 + $0x8] sm:$0xff]   ;;  %v3053_v3 = vld [vmem:[%s4227_s0 + $0x10] sm:$0xff]  }
   0x2   :  { %v3051_v1 = vld [vmem:[%s4227_s0] sm:$0xff]   ;;  %2724 = vmatprep.subr.bf16.mxu0 %v3050_v0  ;;  %v3054_v4 = vld [vmem:[%s4227_s0 + $0x18] sm:$0xff]   ;;  %v3056_v6 = vld [vmem:[%s4227_s0 + $0x28] sm:$0xff]  }
   0x3   :  { %2725 = vmatpush3.bf16.msra.mxu0 %v3050_v0  ;;  %2726 = vmatprep.mubr.msk.bf16.mxu0 %vm276_vm0, %v3051_v1  ;;  %v3055_v5 = vld [vmem:[%s4227_s0 + $0x20] sm:$0xff]   ;;  %v3057_v7 = vld [vmem:[%s4227_s0 + $0x30] sm:$0xff]   ;;  %v3058_v8 = vld [vmem:[%s4227_s0 + $0x38] sm:$0xff]  }
   0x4   :  { %v3059_v9 = vld [vmem:[%s4227_s0 + $0x40] sm:$0xff]   ;;  %v3060_v10 = vld [vmem:[%s4227_s0 + $0x48] sm:$0xff]   ;;  %v3061_v13 = vld [vmem:[%s4227_s0 + $0x50] sm:$0xff]  }
   0x5   :  { %v3083_v11 = vld [vmem:[%s4230_s3] sm:$0xff]   ;;  %v3084_v12 = vld [vmem:[%s4230_s3 + $0x8] sm:$0xff]   ;;  %v3085_v14 = vld [vmem:[%s4230_s3 + $0x10] sm:$0xff]  }
   0x6   :  { %2727 = vmatmul.mubr.msk.bf16.vlgmr.msra.gmra.mrb[0].mxu0 %vm276_vm0, %v3052_v2  ;;  %2790 = vmatprep.subr.bf16.mxu1 %v3083_v11  ;;  %v3086_v15 = vld [vmem:[%s4230_s3 + $0x18] sm:$0xff]   ;;  %v3063_v17 = vld [vmem:[%s4227_s0 + $0x60] sm:$0xff]   ;;  %v3088_v19 = vld [vmem:[%s4230_s3 + $0x28] sm:$0xff]  }
   0x7   :  { %2730 = vmatprep.mubr.msk.bf16.mxu0 %vm276_vm0, %v3053_v3  ;;  %2791 = vmatpush3.bf16.msra.mxu1 %v3083_v11  ;;  %v3062_v16 = vld [vmem:[%s4227_s0 + $0x58] sm:$0xff]   ;;  %v3087_v18 = vld [vmem:[%s4230_s3 + $0x20] sm:$0xff]   ;;  %v3064_v20 = vld [vmem:[%s4227_s0 + $0x68] sm:$0xff]  }
   0x8   :  { %2792 = vmatprep.subr.bf16.mxu1 %v3084_v12  ;;  %v3065_v21 = vld [vmem:[%s4227_s0 + $0x70] sm:$0xff]  }
   0xb   :  { %2793 = vmatpush3.bf16.msra.mxu1 %v3084_v12 }
   0xc   :  { %2794 = vmatprep.subr.bf16.mxu1 %v3085_v14 }
   0xe   :  { %2731 = vmatmul.mubr.msk.bf16.gmra.mrb[4].mxu0 %vm276_vm0, %v3054_v4 }
   0xf   :  { %2734 = vmatprep.mubr.msk.bf16.mxu0 %vm276_vm0, %v3055_v5  ;;  %2795 = vmatpush3.bf16.msra.mxu1 %v3085_v14 }
  0x10   :  { %2796 = vmatprep.subr.bf16.mxu1 %v3086_v15 }
  0x13   :  { %2797 = vmatpush3.bf16.msra.mxu1 %v3086_v15 }
  0x14   :  { %2798 = vmatprep.subr.bf16.mxu1 %v3087_v18 }
  0x16   :  { %2735 = vmatmul.mubr.msk.bf16.gmra.mrb[8].mxu0 %vm276_vm0, %v3056_v6 }
  0x17   :  { %2738 = vmatprep.mubr.msk.bf16.mxu0 %vm276_vm0, %v3057_v7 }
  0x1e   :  { %2739 = vmatmul.mubr.msk.bf16.gmra.mrb[12].mxu0 %vm276_vm0, %v3058_v8 }
  0x1f   :  { %2742 = vmatprep.mubr.msk.bf16.mxu0 %vm276_vm0, %v3059_v9 }
  0x26   :  { %2743 = vmatmul.mubr.msk.bf16.gmra.mrb[16].mxu0 %vm276_vm0, %v3060_v10 }
  0x27   :  { %2746 = vmatprep.mubr.msk.bf16.mxu0 %vm276_vm0, %v3061_v13 }
  0x2e   :  { %2747 = vmatmul.mubr.msk.bf16.gmra.mrb[20].mxu0 %vm276_vm0, %v3062_v16 }
  0x2f   :  { %2750 = vmatprep.mubr.msk.bf16.mxu0 %vm276_vm0, %v3063_v17 }
  0x30   :  { %17 = vsyncpa [#allocation5], 0  ;;  %2799 = vmatpush3.bf16.msra.mxu1 %v3087_v18  ;;  %v3066_v22 = vld [vmem:[%s4227_s0 + $0x78] sm:$0xff]   ;;  %v3067_v23 = vld [vmem:[%s4227_s0 + $0x80] sm:$0xff]  }
  0x31   :  { %2800 = vmatprep.subr.bf16.mxu1 %v3088_v19  ;;  %v3068_v24 = vld [vmem:[%s4227_s0 + $0x88] sm:$0xff]   ;;  %v3069_v25 = vld [vmem:[%s4227_s0 + $0x90] sm:$0xff]   ;;  %v3070_v26 = vld [vmem:[%s4227_s0 + $0x98] sm:$0xff]  }
  0x32   :  { %v3071_v27 = vld [vmem:[%s4227_s0 + $0xa0] sm:$0xff]   ;;  %v3072_v28 = vld [vmem:[%s4227_s0 + $0xa8] sm:$0xff]   ;;  %v3073_v29 = vld [vmem:[%s4227_s0 + $0xb0] sm:$0xff]  }
  0x33   :  { %v3074_v30 = vld [vmem:[%s4227_s0 + $0xb8] sm:$0xff]   ;;  %v3089_v31 = vld [vmem:[%s4230_s3 + $0x30] sm:$0xff]   ;;  %v3075_v32 = vld [vmem:[%s4227_s0 + $0xc0] sm:$0xff]  }
  0x34   :  { %2801 = vmatpush3.bf16.msra.mxu1 %v3088_v19  ;;  %v3090_v33 = vld [vmem:[%s4230_s3 + $0x38] sm:$0xff]   ;;  %v3076_v34 = vld [vmem:[%s4227_s0 + $0xc8] sm:$0xff]   ;;  %v3077_v35 = vld [vmem:[%s4227_s0 + $0xd0] sm:$0xff]  }
  0x35   :  { %2802 = vmatprep.subr.bf16.mxu1 %v3089_v31  ;;  %v3078_v36 = vld [vmem:[%s4227_s0 + $0xd8] sm:$0xff]   ;;  %v3079_v37 = vld [vmem:[%s4227_s0 + $0xe0] sm:$0xff]   ;;  %v3080_v38 = vld [vmem:[%s4227_s0 + $0xe8] sm:$0xff]  }
  0x36   :  { %2751 = vmatmul.mubr.msk.bf16.gmra.mrb[24].mxu0 %vm276_vm0, %v3064_v20  ;;  %v3081_v39 = vld [vmem:[%s4227_s0 + $0xf0] sm:$0xff]   ;;  %v3082_v40 = vld [vmem:[%s4227_s0 + $0xf8] sm:$0xff]   ;;  %v3091_v41 = vld [vmem:[%s4232_s5] sm:$0xff]  }
  0x37   :  { %2754 = vmatprep.mubr.msk.bf16.mxu0 %vm276_vm0, %v3065_v21  ;;  %2870 = vmatprep.subr.bf16.mxu0 %v3091_v41  ;;  %v3503_v42 = vld [vmem:[%s4234_s7] sm:$0xff]   ;;  %v3093_v43 = vld [vmem:[%s4232_s5 + $0x8] sm:$0xff]   ;;  %v3095_v52 = vld [vmem:[%s4232_s5 + $0x10] sm:$0xff]  }
  0x38   :  { %2803 = vmatpush3.bf16.msra.mxu1 %v3089_v31  ;;  %2871 = vmatpush3.bf16.msra.mxu0 %v3091_v41  ;;  %v3512_v44 = vld [vmem:[%s4229_s2] ss:$0 sm:$0xff]  ;;  %v3097_v53 = vld [vmem:[%s4232_s5 + $0x18] sm:$0xff]   ;;  %v3531_v1 = vld [vmem:[%s4234_s7 + $0x8] sm:$0xff]  }
  0x39   :  { %2804 = vmatprep.subr.bf16.mxu1 %v3090_v33  ;;  %2872 = vmatprep.subr.bf16.mxu0 %v3093_v43  ;;  %v3099_v60 = vld [vmem:[%s4232_s5 + $0x20] sm:$0xff]   ;;  %v3101_v6 = vld [vmem:[%s4232_s5 + $0x28] sm:$0xff]   ;;  %v3544_v10 = vld [vmem:[%s4234_s7 + $0x10] sm:$0xff]  }
  0x3a   :  { %v3103_v14 = vld [vmem:[%s4232_s5 + $0x30] sm:$0xff]   ;;  %v3555_v19 = vld [vmem:[%s4234_s7 + $0x18] sm:$0xff]  }
  0x3c   :  { %2805 = vmatpush3.bf16.msra.mxu1 %v3090_v33  ;;  %2873 = vmatpush3.bf16.msra.mxu0 %v3093_v43 }
  0x3d   :  { %3030 = vmatprep.subr.bf16.mxu1 %v3503_v42  ;;  %2874 = vmatprep.subr.bf16.mxu0 %v3095_v52 }
  0x3e   :  { %2755 = vmatmul.mubr.msk.bf16.gmra.mrb[28].mxu0 %vm276_vm0, %v3066_v22 }
  0x3f   :  { %2758 = vmatprep.mubr.msk.bf16.mxu0 %vm276_vm0, %v3067_v23 }
  0x40   :  { %2875 = vmatpush3.bf16.msra.mxu0 %v3095_v52 }
  0x41   :  { %2876 = vmatprep.subr.bf16.mxu0 %v3097_v53 }
  0x44   :  { %2877 = vmatpush3.bf16.msra.mxu0 %v3097_v53 }
  0x45   :  { %2878 = vmatprep.subr.bf16.mxu0 %v3099_v60 }
  0x46   :  { %2759 = vmatmul.mubr.msk.bf16.gmra.mrb[32].mxu0 %vm276_vm0, %v3068_v24  ;;  %v3105_v24 = vld [vmem:[%s4232_s5 + $0x38] sm:$0xff]  }
  0x47   :  { %2762 = vmatprep.mubr.msk.bf16.mxu0 %vm276_vm0, %v3069_v25 }
  0x48   :  { %2879 = vmatpush3.bf16.msra.mxu0 %v3099_v60 }
  0x49   :  { %2880 = vmatprep.subr.bf16.mxu0 %v3101_v6 }
  0x4c   :  { %2881 = vmatpush3.bf16.msra.mxu0 %v3101_v6 }
  0x4d   :  { %2882 = vmatprep.subr.bf16.mxu0 %v3103_v14 }
  0x4e   :  { %2763 = vmatmul.mubr.msk.bf16.gmra.mrb[36].mxu0 %vm276_vm0, %v3070_v26 }
  0x4f   :  { %2766 = vmatprep.mubr.msk.bf16.mxu0 %vm276_vm0, %v3071_v27 }
  0x50   :  { %2883 = vmatpush3.bf16.msra.mxu0 %v3103_v14 }
  0x51   :  { %2884 = vmatprep.subr.bf16.mxu0 %v3105_v24 }
  0x54   :  { %2885 = vmatpush3.bf16.msra.mxu0 %v3105_v24 }
  0x55   :  { %2950 = vmatprep.subr.bf16.mxu0 %v3503_v42 }
  0x56   :  { %2767 = vmatmul.mubr.msk.bf16.gmra.mrb[40].mxu0 %vm276_vm0, %v3072_v28  ;;  %v3568_v28 = vld [vmem:[%s4234_s7 + $0x20] sm:$0xff]  }
  0x57   :  { %2770 = vmatprep.mubr.msk.bf16.mxu0 %vm276_vm0, %v3073_v29 }
  0x5e   :  { %2771 = vmatmul.mubr.msk.bf16.gmra.mrb[44].mxu0 %vm276_vm0, %v3074_v30 }
  0x5f   :  { %2774 = vmatprep.mubr.msk.bf16.mxu0 %vm276_vm0, %v3075_v32 }
  0x66   :  { %2775 = vmatmul.mubr.msk.bf16.gmra.mrb[48].mxu0 %vm276_vm0, %v3076_v34 }
  0x67   :  { %2778 = vmatprep.mubr.msk.bf16.mxu0 %vm276_vm0, %v3077_v35 }
  0x6e   :  { %2779 = vmatmul.mubr.msk.bf16.gmra.mrb[52].mxu0 %vm276_vm0, %v3078_v36  ;;  %v3576_v36 = vld [vmem:[%s4234_s7 + $0x28] sm:$0xff]  }
  0x6f   :  { %2782 = vmatprep.mubr.msk.bf16.mxu0 %vm276_vm0, %v3079_v37 }
  0x76   :  { %2783 = vmatmul.mubr.msk.bf16.gmra.mrb[56].mxu0 %vm276_vm0, %v3080_v38 }
  0x77   :  { %2786 = vmatprep.mubr.msk.bf16.mxu0 %vm276_vm0, %v3081_v39 }
  0x7e   :  { %2787 = vmatmul.mubr.msk.bf16.gmra.mrb[60].mxu0 %vm276_vm0, %v3082_v40 }
  0xd9   :  { %v2728_v45 = vpop.f32.mrb[0].mxu0 }
  0xda   :  { %v416_v46 = vadd.f32 %v2728_v45, %v3512_v44  ;;  %v407_v47 = vpop.f32.mrb[1].mxu0 }
  0xdb   :  { %v408_v48 = vadd.f32 %v3512_v44, %v407_v47  ;;  %v2729_v49 = vpop.f32.mrb[2].mxu0 }
  0xdc   :  { %v419_v50 = vadd.f32 %v2729_v49, %v3512_v44  ;;  %v410_v51 = vpop.f32.mrb[3].mxu0  ;;  %v664_v55 = vmax.f32 %v416_v46, 0.0  ;;  %v3587_v46 = vld [vmem:[%s4234_s7 + $0x30] sm:$0xff]  }
  0xdd   :  { %v411_v54 = vadd.f32 %v3512_v44, %v410_v51  ;;  %v662_v57 = vmax.f32 %v408_v48, 0.0 }
  0xde   :  { %v665_v56 = vmax.f32 %v419_v50, 0.0 }
  0xdf   :  { %v663_v58 = vmax.f32 %v411_v54, 0.0 }
  0xe0   :  { %v727_v59 = vpack.c.bf16 %v665_v56, %v664_v55 }
  0xe1   :  { %v2732_v61 = vpop.f32.mrb[4].mxu0  ;;  %v726_v62 = vpack.c.bf16 %v663_v58, %v662_v57 }
  0xe2   :  { %v432_v63 = vadd.f32 %v2732_v61, %v3512_v44  ;;  %v423_v0 = vpop.f32.mrb[5].mxu0 }
  0xe3   :  { %v424_v2 = vadd.f32 %v3512_v44, %v423_v0  ;;  %v2733_v3 = vpop.f32.mrb[6].mxu0  ;;  %2806 = vmatprep.mubr.bf16.mxu1 %v726_v62 }
  0xe4   :  { %v435_v4 = vadd.f32 %v2733_v3, %v3512_v44  ;;  %v426_v5 = vpop.f32.mrb[7].mxu0  ;;  %2807 = vmatmul.mubr.bf16.vlgmr.msra.gmra.mrb[0].mxu1 %v727_v59  ;;  %v668_v8 = vmax.f32 %v432_v63, 0.0 }
  0xe5   :  { %v427_v7 = vadd.f32 %v3512_v44, %v426_v5  ;;  %3038 = vmatpush3.bf16.msra.mxu1 %v3503_v42  ;;  %v666_v11 = vmax.f32 %v424_v2, 0.0 }
  0xe6   :  { %v669_v9 = vmax.f32 %v435_v4, 0.0  ;;  %3031 = vmatprep.subr.bf16.mxu1 %v3531_v1 }
  0xe7   :  { %v667_v12 = vmax.f32 %v427_v7, 0.0 }
  0xe8   :  { %v729_v13 = vpack.c.bf16 %v669_v9, %v668_v8 }
  0xe9   :  { %v728_v15 = vpack.c.bf16 %v667_v12, %v666_v11  ;;  %v2736_v16 = vpop.f32.mrb[8].mxu0  ;;  %3039 = vmatpush3.bf16.msra.mxu1 %v3531_v1 }
  0xea   :  { %v448_v17 = vadd.f32 %v2736_v16, %v3512_v44  ;;  %v439_v18 = vpop.f32.mrb[9].mxu0  ;;  %3032 = vmatprep.subr.bf16.mxu1 %v3544_v10 }
  0xeb   :  { %v440_v20 = vadd.f32 %v3512_v44, %v439_v18  ;;  %v2737_v21 = vpop.f32.mrb[10].mxu0  ;;  %2810 = vmatprep.mubr.bf16.mxu1 %v728_v15 }
  0xec   :  { %v451_v22 = vadd.f32 %v2737_v21, %v3512_v44  ;;  %v442_v23 = vpop.f32.mrb[11].mxu0  ;;  %2811 = vmatmul.mubr.bf16.gmra.mrb[4].mxu1 %v729_v13  ;;  %v672_v26 = vmax.f32 %v448_v17, 0.0 }
  0xed   :  { %v443_v25 = vadd.f32 %v3512_v44, %v442_v23  ;;  %3040 = vmatpush3.bf16.msra.mxu1 %v3544_v10  ;;  %v670_v29 = vmax.f32 %v440_v20, 0.0 }
  0xee   :  { %v673_v27 = vmax.f32 %v451_v22, 0.0  ;;  %3033 = vmatprep.subr.bf16.mxu1 %v3555_v19 }
  0xef   :  { %v671_v30 = vmax.f32 %v443_v25, 0.0 }
  0xf0   :  { %v731_v31 = vpack.c.bf16 %v673_v27, %v672_v26 }
  0xf1   :  { %v730_v32 = vpack.c.bf16 %v671_v30, %v670_v29  ;;  %v2740_v33 = vpop.f32.mrb[12].mxu0  ;;  %3041 = vmatpush3.bf16.msra.mxu1 %v3555_v19 }
  0xf2   :  { %v464_v34 = vadd.f32 %v2740_v33, %v3512_v44  ;;  %v455_v35 = vpop.f32.mrb[13].mxu0  ;;  %3034 = vmatprep.subr.bf16.mxu1 %v3568_v28 }
  0xf3   :  { %v456_v37 = vadd.f32 %v3512_v44, %v455_v35  ;;  %v2741_v38 = vpop.f32.mrb[14].mxu0  ;;  %2814 = vmatprep.mubr.bf16.mxu1 %v730_v32 }
  0xf4   :  { %v467_v39 = vadd.f32 %v2741_v38, %v3512_v44  ;;  %v458_v40 = vpop.f32.mrb[15].mxu0  ;;  %2815 = vmatmul.mubr.bf16.gmra.mrb[8].mxu1 %v731_v31  ;;  %v676_v43 = vmax.f32 %v464_v34, 0.0 }
  0xf5   :  { %v459_v41 = vadd.f32 %v3512_v44, %v458_v40  ;;  %3042 = vmatpush3.bf16.msra.mxu1 %v3568_v28  ;;  %v674_v47 = vmax.f32 %v456_v37, 0.0 }
  0xf6   :  { %v677_v45 = vmax.f32 %v467_v39, 0.0  ;;  %3035 = vmatprep.subr.bf16.mxu1 %v3576_v36 }
  0xf7   :  { %v675_v48 = vmax.f32 %v459_v41, 0.0 }
  0xf8   :  { %v733_v49 = vpack.c.bf16 %v677_v45, %v676_v43 }
  0xf9   :  { %v732_v50 = vpack.c.bf16 %v675_v48, %v674_v47  ;;  %v2744_v51 = vpop.f32.mrb[16].mxu0  ;;  %3043 = vmatpush3.bf16.msra.mxu1 %v3576_v36 }
  0xfa   :  { %v480_v52 = vadd.f32 %v2744_v51, %v3512_v44  ;;  %v471_v53 = vpop.f32.mrb[17].mxu0  ;;  %3036 = vmatprep.subr.bf16.mxu1 %v3587_v46 }
  0xfb   :  { %v472_v54 = vadd.f32 %v3512_v44, %v471_v53  ;;  %v2745_v55 = vpop.f32.mrb[18].mxu0  ;;  %2818 = vmatprep.mubr.bf16.mxu1 %v732_v50 }
  0xfc   :  { %v483_v56 = vadd.f32 %v2745_v55, %v3512_v44  ;;  %v474_v57 = vpop.f32.mrb[19].mxu0  ;;  %2819 = vmatmul.mubr.bf16.gmra.mrb[12].mxu1 %v733_v49  ;;  %v680_v59 = vmax.f32 %v480_v52, 0.0 }
  0xfd   :  { %v475_v58 = vadd.f32 %v3512_v44, %v474_v57  ;;  %3044 = vmatpush3.bf16.msra.mxu1 %v3587_v46  ;;  %v678_v61 = vmax.f32 %v472_v54, 0.0 }
  0xfe   :  { %v681_v60 = vmax.f32 %v483_v56, 0.0 }
  0xff   :  { %v679_v62 = vmax.f32 %v475_v58, 0.0 }
 0x100   :  { %v735_v63 = vpack.c.bf16 %v681_v60, %v680_v59 }
 0x101   :  { %v734_v0 = vpack.c.bf16 %v679_v62, %v678_v61  ;;  %v2748_v2 = vpop.f32.mrb[20].mxu0 }
 0x102   :  { %v496_v3 = vadd.f32 %v2748_v2, %v3512_v44  ;;  %v487_v4 = vpop.f32.mrb[21].mxu0 }
 0x103   :  { %v488_v5 = vadd.f32 %v3512_v44, %v487_v4  ;;  %v2749_v6 = vpop.f32.mrb[22].mxu0  ;;  %2822 = vmatprep.mubr.bf16.mxu1 %v734_v0 }
 0x104   :  { %v499_v7 = vadd.f32 %v2749_v6, %v3512_v44  ;;  %v490_v8 = vpop.f32.mrb[23].mxu0  ;;  %2823 = vmatmul.mubr.bf16.gmra.mrb[16].mxu1 %v735_v63  ;;  %v684_v11 = vmax.f32 %v496_v3, 0.0 }
 0x105   :  { %v491_v9 = vadd.f32 %v3512_v44, %v490_v8  ;;  %v682_v13 = vmax.f32 %v488_v5, 0.0 }
 0x106   :  { %v685_v12 = vmax.f32 %v499_v7, 0.0 }
 0x107   :  { %v683_v14 = vmax.f32 %v491_v9, 0.0 }
 0x108   :  { %v737_v15 = vpack.c.bf16 %v685_v12, %v684_v11 }
 0x109   :  { %v736_v16 = vpack.c.bf16 %v683_v14, %v682_v13  ;;  %v2752_v17 = vpop.f32.mrb[24].mxu0 }
 0x10a   :  { %v512_v18 = vadd.f32 %v2752_v17, %v3512_v44  ;;  %v503_v20 = vpop.f32.mrb[25].mxu0 }
 0x10b   :  { %v504_v21 = vadd.f32 %v3512_v44, %v503_v20  ;;  %v2753_v22 = vpop.f32.mrb[26].mxu0  ;;  %2826 = vmatprep.mubr.bf16.mxu1 %v736_v16 }
 0x10c   :  { %v515_v23 = vadd.f32 %v2753_v22, %v3512_v44  ;;  %v506_v24 = vpop.f32.mrb[27].mxu0  ;;  %2827 = vmatmul.mubr.bf16.gmra.mrb[20].mxu1 %v737_v15  ;;  %v688_v26 = vmax.f32 %v512_v18, 0.0 }
 0x10d   :  { %v507_v25 = vadd.f32 %v3512_v44, %v506_v24  ;;  %v686_v29 = vmax.f32 %v504_v21, 0.0 }
 0x10e   :  { %v689_v27 = vmax.f32 %v515_v23, 0.0 }
 0x10f   :  { %v687_v30 = vmax.f32 %v507_v25, 0.0 }
 0x110   :  { %v739_v31 = vpack.c.bf16 %v689_v27, %v688_v26 }
 0x111   :  { %v738_v32 = vpack.c.bf16 %v687_v30, %v686_v29  ;;  %v2756_v33 = vpop.f32.mrb[28].mxu0 }
 0x112   :  { %v528_v34 = vadd.f32 %v2756_v33, %v3512_v44  ;;  %v519_v35 = vpop.f32.mrb[29].mxu0 }
 0x113   :  { %v520_v37 = vadd.f32 %v3512_v44, %v519_v35  ;;  %v2757_v38 = vpop.f32.mrb[30].mxu0  ;;  %2830 = vmatprep.mubr.bf16.mxu1 %v738_v32 }
 0x114   :  { %v531_v39 = vadd.f32 %v2757_v38, %v3512_v44  ;;  %v522_v40 = vpop.f32.mrb[31].mxu0  ;;  %2831 = vmatmul.mubr.bf16.gmra.mrb[24].mxu1 %v739_v31  ;;  %v692_v43 = vmax.f32 %v528_v34, 0.0 }
 0x115   :  { %v523_v41 = vadd.f32 %v3512_v44, %v522_v40  ;;  %v690_v47 = vmax.f32 %v520_v37, 0.0 }
 0x116   :  { %v693_v45 = vmax.f32 %v531_v39, 0.0 }
 0x117   :  { %v691_v48 = vmax.f32 %v523_v41, 0.0 }
 0x118   :  { %v741_v49 = vpack.c.bf16 %v693_v45, %v692_v43 }
 0x119   :  { %v740_v50 = vpack.c.bf16 %v691_v48, %v690_v47  ;;  %v2760_v51 = vpop.f32.mrb[32].mxu0 }
 0x11a   :  { %v544_v52 = vadd.f32 %v2760_v51, %v3512_v44  ;;  %v535_v53 = vpop.f32.mrb[33].mxu0 }
 0x11b   :  { %v536_v54 = vadd.f32 %v3512_v44, %v535_v53  ;;  %v2761_v55 = vpop.f32.mrb[34].mxu0  ;;  %2834 = vmatprep.mubr.bf16.mxu1 %v740_v50 }
 0x11c   :  { %v547_v56 = vadd.f32 %v2761_v55, %v3512_v44  ;;  %v538_v57 = vpop.f32.mrb[35].mxu0  ;;  %2835 = vmatmul.mubr.bf16.gmra.mrb[28].mxu1 %v741_v49  ;;  %v696_v59 = vmax.f32 %v544_v52, 0.0 }
 0x11d   :  { %v539_v58 = vadd.f32 %v3512_v44, %v538_v57  ;;  %v694_v61 = vmax.f32 %v536_v54, 0.0 }
 0x11e   :  { %v697_v60 = vmax.f32 %v547_v56, 0.0 }
 0x11f   :  { %v695_v62 = vmax.f32 %v539_v58, 0.0 }
 0x120   :  { %v743_v63 = vpack.c.bf16 %v697_v60, %v696_v59 }
 0x121   :  { %v742_v0 = vpack.c.bf16 %v695_v62, %v694_v61  ;;  %v2764_v2 = vpop.f32.mrb[36].mxu0 }
 0x122   :  { %v560_v3 = vadd.f32 %v2764_v2, %v3512_v44  ;;  %v551_v4 = vpop.f32.mrb[37].mxu0 }
 0x123   :  { %v552_v5 = vadd.f32 %v3512_v44, %v551_v4  ;;  %v2765_v6 = vpop.f32.mrb[38].mxu0  ;;  %2838 = vmatprep.mubr.bf16.mxu1 %v742_v0 }
 0x124   :  { %v563_v7 = vadd.f32 %v2765_v6, %v3512_v44  ;;  %v554_v8 = vpop.f32.mrb[39].mxu0  ;;  %2839 = vmatmul.mubr.bf16.gmra.mrb[32].mxu1 %v743_v63  ;;  %v700_v11 = vmax.f32 %v560_v3, 0.0  ;;  %v3631_v63 = vld [vmem:[%s4234_s7 + $0x38] sm:$0xff]  }
 0x125   :  { %v555_v9 = vadd.f32 %v3512_v44, %v554_v8  ;;  %v698_v13 = vmax.f32 %v552_v5, 0.0  ;;  %3037 = vmatprep.subr.bf16.mxu1 %v3631_v63 }
 0x126   :  { %v701_v12 = vmax.f32 %v563_v7, 0.0  ;;  %3045 = vmatpush3.bf16.msra.mxu1 %v3631_v63 }
 0x127   :  { %v699_v14 = vmax.f32 %v555_v9, 0.0 }
 0x128   :  { %v745_v15 = vpack.c.bf16 %v701_v12, %v700_v11 }
 0x129   :  { %v744_v16 = vpack.c.bf16 %v699_v14, %v698_v13  ;;  %v2768_v17 = vpop.f32.mrb[40].mxu0 }
 0x12a   :  { %v576_v18 = vadd.f32 %v2768_v17, %v3512_v44  ;;  %v567_v20 = vpop.f32.mrb[41].mxu0 }
 0x12b   :  { %v568_v21 = vadd.f32 %v3512_v44, %v567_v20  ;;  %v2769_v22 = vpop.f32.mrb[42].mxu0  ;;  %2842 = vmatprep.mubr.bf16.mxu1 %v744_v16 }
 0x12c   :  { %v579_v23 = vadd.f32 %v2769_v22, %v3512_v44  ;;  %v570_v24 = vpop.f32.mrb[43].mxu0  ;;  %2843 = vmatmul.mubr.bf16.gmra.mrb[36].mxu1 %v745_v15  ;;  %v704_v26 = vmax.f32 %v576_v18, 0.0 }
 0x12d   :  { %v571_v25 = vadd.f32 %v3512_v44, %v570_v24  ;;  %v702_v29 = vmax.f32 %v568_v21, 0.0 }
 0x12e   :  { %v705_v27 = vmax.f32 %v579_v23, 0.0 }
 0x12f   :  { %v703_v30 = vmax.f32 %v571_v25, 0.0 }
 0x130   :  { %v747_v31 = vpack.c.bf16 %v705_v27, %v704_v26 }
 0x131   :  { %v746_v32 = vpack.c.bf16 %v703_v30, %v702_v29  ;;  %v2772_v33 = vpop.f32.mrb[44].mxu0 }
 0x132   :  { %v592_v34 = vadd.f32 %v2772_v33, %v3512_v44  ;;  %v583_v35 = vpop.f32.mrb[45].mxu0 }
 0x133   :  { %v584_v37 = vadd.f32 %v3512_v44, %v583_v35  ;;  %v2773_v38 = vpop.f32.mrb[46].mxu0  ;;  %2846 = vmatprep.mubr.bf16.mxu1 %v746_v32 }
 0x134   :  { %v595_v39 = vadd.f32 %v2773_v38, %v3512_v44  ;;  %v586_v40 = vpop.f32.mrb[47].mxu0  ;;  %2847 = vmatmul.mubr.bf16.gmra.mrb[40].mxu1 %v747_v31  ;;  %v708_v43 = vmax.f32 %v592_v34, 0.0 }
 0x135   :  { %v587_v41 = vadd.f32 %v3512_v44, %v586_v40  ;;  %v706_v47 = vmax.f32 %v584_v37, 0.0 }
 0x136   :  { %v709_v45 = vmax.f32 %v595_v39, 0.0 }
 0x137   :  { %v707_v48 = vmax.f32 %v587_v41, 0.0 }
 0x138   :  { %v749_v49 = vpack.c.bf16 %v709_v45, %v708_v43 }
 0x139   :  { %v748_v50 = vpack.c.bf16 %v707_v48, %v706_v47  ;;  %v2776_v51 = vpop.f32.mrb[48].mxu0 }
 0x13a   :  { %v608_v52 = vadd.f32 %v2776_v51, %v3512_v44  ;;  %v599_v53 = vpop.f32.mrb[49].mxu0 }
 0x13b   :  { %v600_v54 = vadd.f32 %v3512_v44, %v599_v53  ;;  %v2777_v55 = vpop.f32.mrb[50].mxu0  ;;  %2850 = vmatprep.mubr.bf16.mxu1 %v748_v50 }
 0x13c   :  { %v611_v56 = vadd.f32 %v2777_v55, %v3512_v44  ;;  %v602_v57 = vpop.f32.mrb[51].mxu0  ;;  %2851 = vmatmul.mubr.bf16.gmra.mrb[44].mxu1 %v749_v49  ;;  %v712_v59 = vmax.f32 %v608_v52, 0.0  ;;  %v3650_v52 = vld [vmem:[%s4231_s4] ss:$0 sm:$0xff] }
 0x13d   :  { %v603_v58 = vadd.f32 %v3512_v44, %v602_v57  ;;  %v710_v61 = vmax.f32 %v600_v54, 0.0 }
 0x13e   :  { %v713_v60 = vmax.f32 %v611_v56, 0.0 }
 0x13f   :  { %v711_v62 = vmax.f32 %v603_v58, 0.0 }
 0x140   :  { %v751_v0 = vpack.c.bf16 %v713_v60, %v712_v59 }
 0x141   :  { %v750_v2 = vpack.c.bf16 %v711_v62, %v710_v61  ;;  %v2780_v3 = vpop.f32.mrb[52].mxu0 }
 0x142   :  { %v624_v4 = vadd.f32 %v2780_v3, %v3512_v44  ;;  %v615_v5 = vpop.f32.mrb[53].mxu0 }
 0x143   :  { %v616_v6 = vadd.f32 %v3512_v44, %v615_v5  ;;  %v2781_v7 = vpop.f32.mrb[54].mxu0  ;;  %2854 = vmatprep.mubr.bf16.mxu1 %v750_v2 }
 0x144   :  { %v627_v8 = vadd.f32 %v2781_v7, %v3512_v44  ;;  %v618_v9 = vpop.f32.mrb[55].mxu0  ;;  %2855 = vmatmul.mubr.bf16.gmra.mrb[48].mxu1 %v751_v0  ;;  %v716_v12 = vmax.f32 %v624_v4, 0.0 }
 0x145   :  { %v619_v11 = vadd.f32 %v3512_v44, %v618_v9  ;;  %v714_v14 = vmax.f32 %v616_v6, 0.0 }
 0x146   :  { %v717_v13 = vmax.f32 %v627_v8, 0.0 }
 0x147   :  { %v715_v15 = vmax.f32 %v619_v11, 0.0 }
 0x148   :  { %v753_v16 = vpack.c.bf16 %v717_v13, %v716_v12 }
 0x149   :  { %v752_v17 = vpack.c.bf16 %v715_v15, %v714_v14  ;;  %v2784_v18 = vpop.f32.mrb[56].mxu0 }
 0x14a   :  { %v640_v20 = vadd.f32 %v2784_v18, %v3512_v44  ;;  %v631_v21 = vpop.f32.mrb[57].mxu0 }
 0x14b   :  { %v632_v22 = vadd.f32 %v3512_v44, %v631_v21  ;;  %v2785_v23 = vpop.f32.mrb[58].mxu0  ;;  %2858 = vmatprep.mubr.bf16.mxu1 %v752_v17 }
 0x14c   :  { %v643_v24 = vadd.f32 %v2785_v23, %v3512_v44  ;;  %v634_v25 = vpop.f32.mrb[59].mxu0  ;;  %2859 = vmatmul.mubr.bf16.gmra.mrb[52].mxu1 %v753_v16  ;;  %v720_v27 = vmax.f32 %v640_v20, 0.0 }
 0x14d   :  { %v635_v26 = vadd.f32 %v3512_v44, %v634_v25  ;;  %v718_v30 = vmax.f32 %v632_v22, 0.0 }
 0x14e   :  { %v721_v29 = vmax.f32 %v643_v24, 0.0 }
 0x14f   :  { %v719_v31 = vmax.f32 %v635_v26, 0.0 }
 0x150   :  { %v755_v32 = vpack.c.bf16 %v721_v29, %v720_v27 }
 0x151   :  { %v754_v33 = vpack.c.bf16 %v719_v31, %v718_v30  ;;  %v2788_v34 = vpop.f32.mrb[60].mxu0 }
 0x152   :  { %v656_v35 = vadd.f32 %v2788_v34, %v3512_v44  ;;  %v647_v37 = vpop.f32.mrb[61].mxu0 }
 0x153   :  { %v648_v38 = vadd.f32 %v3512_v44, %v647_v37  ;;  %v2789_v39 = vpop.f32.mrb[62].mxu0  ;;  %2862 = vmatprep.mubr.bf16.mxu1 %v754_v33 }
 0x154   :  { %v659_v40 = vadd.f32 %v2789_v39, %v3512_v44  ;;  %v650_v41 = vpop.f32.mrb[63].mxu0  ;;  %2863 = vmatmul.mubr.bf16.gmra.mrb[56].mxu1 %v755_v32  ;;  %v724_v45 = vmax.f32 %v656_v35, 0.0 }
 0x155   :  { %v651_v43 = vadd.f32 %v3512_v44, %v650_v41  ;;  %v722_v48 = vmax.f32 %v648_v38, 0.0 }
 0x156   :  { %v725_v47 = vmax.f32 %v659_v40, 0.0 }
 0x157   :  { %v723_v49 = vmax.f32 %v651_v43, 0.0 }
 0x158   :  { %v757_v50 = vpack.c.bf16 %v725_v47, %v724_v45 }
 0x159   :  { %v756_v51 = vpack.c.bf16 %v723_v49, %v722_v48 }
 0x15b   :  { %2866 = vmatprep.mubr.bf16.mxu1 %v756_v51 }
 0x15c   :  { %2867 = vmatmul.mubr.bf16.gmra.mrb[60].mxu1 %v757_v50 }
 0x1b7   :  { %v2808_v53 = vpop.f32.mrb[0].mxu1 }
 0x1b8   :  { %v872_v54 = vadd.f32 %v2808_v53, %v3650_v52  ;;  %v863_v55 = vpop.f32.mrb[1].mxu1 }
 0x1b9   :  { %v864_v56 = vadd.f32 %v3650_v52, %v863_v55  ;;  %v2809_v44 = vpop.f32.mrb[2].mxu1 }
 0x1ba   :  { %v875_v57 = vadd.f32 %v2809_v44, %v3650_v52  ;;  %v866_v58 = vpop.f32.mrb[3].mxu1  ;;  %v1120_v60 = vmax.f32 %v872_v54, 0.0 }
 0x1bb   :  { %v867_v59 = vadd.f32 %v3650_v52, %v866_v58  ;;  %v1118_v62 = vmax.f32 %v864_v56, 0.0 }
 0x1bc   :  { %v1121_v61 = vmax.f32 %v875_v57, 0.0 }
 0x1bd   :  { %v1119_v0 = vmax.f32 %v867_v59, 0.0 }
 0x1be   :  { %v3656_v2 = vpack.c.bf16 %v1121_v61, %v1120_v60 }
 0x1bf   :  { %v3658_v3 = vpack.c.bf16 %v1119_v0, %v1118_v62  ;;  %v2812_v4 = vpop.f32.mrb[4].mxu1 }
 0x1c0   :  { %v888_v5 = vadd.f32 %v2812_v4, %v3650_v52  ;;  %v879_v6 = vpop.f32.mrb[5].mxu1 }
 0x1c1   :  { %v880_v7 = vadd.f32 %v3650_v52, %v879_v6  ;;  %v2813_v8 = vpop.f32.mrb[6].mxu1  ;;  %2886 = vmatprep.mubr.bf16.mxu0 %v3658_v3 }
 0x1c2   :  { %v891_v9 = vadd.f32 %v2813_v8, %v3650_v52  ;;  %v882_v11 = vpop.f32.mrb[7].mxu1  ;;  %2887 = vmatmul.mubr.bf16.vlgmr.msra.gmra.mrb[64].mxu0 %v3656_v2  ;;  %v1124_v13 = vmax.f32 %v888_v5, 0.0 }
 0x1c3   :  { %v883_v12 = vadd.f32 %v3650_v52, %v882_v11  ;;  %2951 = vmatpush3.bf16.msra.mxu0 %v3503_v42  ;;  %v1122_v15 = vmax.f32 %v880_v7, 0.0 }
 0x1c4   :  { %v1125_v14 = vmax.f32 %v891_v9, 0.0  ;;  %2952 = vmatprep.subr.bf16.mxu0 %v3531_v1 }
 0x1c5   :  { %v1123_v16 = vmax.f32 %v883_v12, 0.0 }
 0x1c6   :  { %v1185_v17 = vpack.c.bf16 %v1125_v14, %v1124_v13 }
 0x1c7   :  { %v1184_v18 = vpack.c.bf16 %v1123_v16, %v1122_v15  ;;  %v2816_v20 = vpop.f32.mrb[8].mxu1  ;;  %2953 = vmatpush3.bf16.msra.mxu0 %v3531_v1 }
 0x1c8   :  { %v904_v21 = vadd.f32 %v2816_v20, %v3650_v52  ;;  %v895_v22 = vpop.f32.mrb[9].mxu1  ;;  %2954 = vmatprep.subr.bf16.mxu0 %v3544_v10 }
 0x1c9   :  { %v896_v23 = vadd.f32 %v3650_v52, %v895_v22  ;;  %v2817_v24 = vpop.f32.mrb[10].mxu1  ;;  %2890 = vmatprep.mubr.bf16.mxu0 %v1184_v18  ;;  %2970 = vmatprep.mubr.bf16.mxu1 %v1184_v18 }
 0x1ca   :  { %v907_v42 = vadd.f32 %v2817_v24, %v3650_v52  ;;  %v898_v25 = vpop.f32.mrb[11].mxu1  ;;  %2891 = vmatmul.mubr.bf16.gmra.mrb[68].mxu0 %v1185_v17  ;;  %2971 = vmatmul.mubr.bf16.vlgmr.msra.gmra.mrb[64].mxu1 %v1185_v17  ;;  %v1128_v1 = vmax.f32 %v904_v21, 0.0 }
 0x1cb   :  { %v899_v26 = vadd.f32 %v3650_v52, %v898_v25  ;;  %2955 = vmatpush3.bf16.msra.mxu0 %v3544_v10  ;;  %v1126_v29 = vmax.f32 %v896_v23, 0.0 }
 0x1cc   :  { %v1129_v27 = vmax.f32 %v907_v42, 0.0  ;;  %2956 = vmatprep.subr.bf16.mxu0 %v3555_v19 }
 0x1cd   :  { %v1127_v30 = vmax.f32 %v899_v26, 0.0 }
 0x1ce   :  { %v1187_v31 = vpack.c.bf16 %v1129_v27, %v1128_v1 }
 0x1cf   :  { %v1186_v32 = vpack.c.bf16 %v1127_v30, %v1126_v29  ;;  %v2820_v33 = vpop.f32.mrb[12].mxu1  ;;  %2957 = vmatpush3.bf16.msra.mxu0 %v3555_v19 }
 0x1d0   :  { %v920_v34 = vadd.f32 %v2820_v33, %v3650_v52  ;;  %v911_v35 = vpop.f32.mrb[13].mxu1  ;;  %2958 = vmatprep.subr.bf16.mxu0 %v3568_v28 }
 0x1d1   :  { %v912_v37 = vadd.f32 %v3650_v52, %v911_v35  ;;  %v2821_v38 = vpop.f32.mrb[14].mxu1  ;;  %2894 = vmatprep.mubr.bf16.mxu0 %v1186_v32  ;;  %2974 = vmatprep.mubr.bf16.mxu1 %v1186_v32 }
 0x1d2   :  { %v923_v10 = vadd.f32 %v2821_v38, %v3650_v52  ;;  %v914_v39 = vpop.f32.mrb[15].mxu1  ;;  %2895 = vmatmul.mubr.bf16.gmra.mrb[72].mxu0 %v1187_v31  ;;  %2975 = vmatmul.mubr.bf16.gmra.mrb[68].mxu1 %v1187_v31  ;;  %v1132_v19 = vmax.f32 %v920_v34, 0.0 }
 0x1d3   :  { %v915_v40 = vadd.f32 %v3650_v52, %v914_v39  ;;  %2959 = vmatpush3.bf16.msra.mxu0 %v3568_v28  ;;  %v1130_v43 = vmax.f32 %v912_v37, 0.0 }
 0x1d4   :  { %v1133_v41 = vmax.f32 %v923_v10, 0.0  ;;  %2960 = vmatprep.subr.bf16.mxu0 %v3576_v36 }
 0x1d5   :  { %v1131_v45 = vmax.f32 %v915_v40, 0.0 }
 0x1d6   :  { %v1189_v47 = vpack.c.bf16 %v1133_v41, %v1132_v19 }
 0x1d7   :  { %v1188_v48 = vpack.c.bf16 %v1131_v45, %v1130_v43  ;;  %v2824_v49 = vpop.f32.mrb[16].mxu1  ;;  %2961 = vmatpush3.bf16.msra.mxu0 %v3576_v36 }
 0x1d8   :  { %v936_v50 = vadd.f32 %v2824_v49, %v3650_v52  ;;  %v927_v51 = vpop.f32.mrb[17].mxu1  ;;  %2962 = vmatprep.subr.bf16.mxu0 %v3587_v46 }
 0x1d9   :  { %v928_v53 = vadd.f32 %v3650_v52, %v927_v51  ;;  %v2825_v54 = vpop.f32.mrb[18].mxu1  ;;  %2898 = vmatprep.mubr.bf16.mxu0 %v1188_v48  ;;  %2978 = vmatprep.mubr.bf16.mxu1 %v1188_v48 }
 0x1da   :  { %v939_v28 = vadd.f32 %v2825_v54, %v3650_v52  ;;  %v930_v55 = vpop.f32.mrb[19].mxu1  ;;  %2899 = vmatmul.mubr.bf16.gmra.mrb[76].mxu0 %v1189_v47  ;;  %2979 = vmatmul.mubr.bf16.gmra.mrb[72].mxu1 %v1189_v47  ;;  %v1136_v36 = vmax.f32 %v936_v50, 0.0 }
 0x1db   :  { %v931_v56 = vadd.f32 %v3650_v52, %v930_v55  ;;  %2963 = vmatpush3.bf16.msra.mxu0 %v3587_v46  ;;  %v1134_v57 = vmax.f32 %v928_v53, 0.0 }
 0x1dc   :  { %v1137_v44 = vmax.f32 %v939_v28, 0.0  ;;  %2964 = vmatprep.subr.bf16.mxu0 %v3631_v63 }
 0x1dd   :  { %v1135_v58 = vmax.f32 %v931_v56, 0.0 }
 0x1de   :  { %v1191_v59 = vpack.c.bf16 %v1137_v44, %v1136_v36 }
 0x1df   :  { %v1190_v60 = vpack.c.bf16 %v1135_v58, %v1134_v57  ;;  %v2828_v61 = vpop.f32.mrb[20].mxu1  ;;  %2965 = vmatpush3.bf16.msra.mxu0 %v3631_v63 }
 0x1e0   :  { %v952_v62 = vadd.f32 %v2828_v61, %v3650_v52  ;;  %v943_v0 = vpop.f32.mrb[21].mxu1 }
 0x1e1   :  { %v944_v4 = vadd.f32 %v3650_v52, %v943_v0  ;;  %v2829_v5 = vpop.f32.mrb[22].mxu1  ;;  %2902 = vmatprep.mubr.bf16.mxu0 %v1190_v60  ;;  %2982 = vmatprep.mubr.bf16.mxu1 %v1190_v60 }
 0x1e2   :  { %v955_v46 = vadd.f32 %v2829_v5, %v3650_v52  ;;  %v946_v6 = vpop.f32.mrb[23].mxu1  ;;  %2903 = vmatmul.mubr.bf16.gmra.mrb[80].mxu0 %v1191_v59  ;;  %2983 = vmatmul.mubr.bf16.gmra.mrb[76].mxu1 %v1191_v59  ;;  %v1140_v8 = vmax.f32 %v952_v62, 0.0 }
 0x1e3   :  { %v947_v7 = vadd.f32 %v3650_v52, %v946_v6  ;;  %v1138_v11 = vmax.f32 %v944_v4, 0.0 }
 0x1e4   :  { %v1141_v9 = vmax.f32 %v955_v46, 0.0 }
 0x1e5   :  { %v1139_v12 = vmax.f32 %v947_v7, 0.0 }
 0x1e6   :  { %v1193_v63 = vpack.c.bf16 %v1141_v9, %v1140_v8 }
 0x1e7   :  { %v1192_v13 = vpack.c.bf16 %v1139_v12, %v1138_v11  ;;  %v2832_v14 = vpop.f32.mrb[24].mxu1 }
 0x1e8   :  { %v968_v15 = vadd.f32 %v2832_v14, %v3650_v52  ;;  %v959_v16 = vpop.f32.mrb[25].mxu1 }
 0x1e9   :  { %v960_v17 = vadd.f32 %v3650_v52, %v959_v16  ;;  %v2833_v18 = vpop.f32.mrb[26].mxu1  ;;  %2906 = vmatprep.mubr.bf16.mxu0 %v1192_v13  ;;  %2986 = vmatprep.mubr.bf16.mxu1 %v1192_v13 }
 0x1ea   :  { %v971_v20 = vadd.f32 %v2833_v18, %v3650_v52  ;;  %v962_v21 = vpop.f32.mrb[27].mxu1  ;;  %2907 = vmatmul.mubr.bf16.gmra.mrb[84].mxu0 %v1193_v63  ;;  %2987 = vmatmul.mubr.bf16.gmra.mrb[80].mxu1 %v1193_v63  ;;  %v1144_v23 = vmax.f32 %v968_v15, 0.0 }
 0x1eb   :  { %v963_v22 = vadd.f32 %v3650_v52, %v962_v21  ;;  %v1142_v42 = vmax.f32 %v960_v17, 0.0 }
 0x1ec   :  { %v1145_v24 = vmax.f32 %v971_v20, 0.0 }
 0x1ed   :  { %v1143_v25 = vmax.f32 %v963_v22, 0.0 }
 0x1ee   :  { %v1195_v26 = vpack.c.bf16 %v1145_v24, %v1144_v23 }
 0x1ef   :  { %v1194_v1 = vpack.c.bf16 %v1143_v25, %v1142_v42  ;;  %v2836_v27 = vpop.f32.mrb[28].mxu1 }
 0x1f0   :  { %v984_v29 = vadd.f32 %v2836_v27, %v3650_v52  ;;  %v975_v30 = vpop.f32.mrb[29].mxu1 }
 0x1f1   :  { %v976_v31 = vadd.f32 %v3650_v52, %v975_v30  ;;  %v2837_v32 = vpop.f32.mrb[30].mxu1  ;;  %2910 = vmatprep.mubr.bf16.mxu0 %v1194_v1  ;;  %2990 = vmatprep.mubr.bf16.mxu1 %v1194_v1 }
 0x1f2   :  { %v987_v33 = vadd.f32 %v2837_v32, %v3650_v52  ;;  %v978_v34 = vpop.f32.mrb[31].mxu1  ;;  %2911 = vmatmul.mubr.bf16.gmra.mrb[88].mxu0 %v1195_v26  ;;  %2991 = vmatmul.mubr.bf16.gmra.mrb[84].mxu1 %v1195_v26  ;;  %v1148_v37 = vmax.f32 %v984_v29, 0.0 }
 0x1f3   :  { %v979_v35 = vadd.f32 %v3650_v52, %v978_v34  ;;  %v1146_v10 = vmax.f32 %v976_v31, 0.0 }
 0x1f4   :  { %v1149_v38 = vmax.f32 %v987_v33, 0.0 }
 0x1f5   :  { %v1147_v39 = vmax.f32 %v979_v35, 0.0 }
 0x1f6   :  { %v1197_v40 = vpack.c.bf16 %v1149_v38, %v1148_v37 }
 0x1f7   :  { %v1196_v19 = vpack.c.bf16 %v1147_v39, %v1146_v10  ;;  %v2840_v41 = vpop.f32.mrb[32].mxu1 }
 0x1f8   :  { %v1000_v43 = vadd.f32 %v2840_v41, %v3650_v52  ;;  %v991_v45 = vpop.f32.mrb[33].mxu1 }
 0x1f9   :  { %v992_v47 = vadd.f32 %v3650_v52, %v991_v45  ;;  %v2841_v48 = vpop.f32.mrb[34].mxu1  ;;  %2914 = vmatprep.mubr.bf16.mxu0 %v1196_v19  ;;  %2994 = vmatprep.mubr.bf16.mxu1 %v1196_v19 }
 0x1fa   :  { %v1003_v49 = vadd.f32 %v2841_v48, %v3650_v52  ;;  %v994_v50 = vpop.f32.mrb[35].mxu1  ;;  %2915 = vmatmul.mubr.bf16.gmra.mrb[92].mxu0 %v1197_v40  ;;  %2995 = vmatmul.mubr.bf16.gmra.mrb[88].mxu1 %v1197_v40  ;;  %v1152_v53 = vmax.f32 %v1000_v43, 0.0 }
 0x1fb   :  { %v995_v51 = vadd.f32 %v3650_v52, %v994_v50  ;;  %v1150_v28 = vmax.f32 %v992_v47, 0.0 }
 0x1fc   :  { %v1153_v54 = vmax.f32 %v1003_v49, 0.0 }
 0x1fd   :  { %v1151_v55 = vmax.f32 %v995_v51, 0.0 }
 0x1fe   :  { %v1199_v56 = vpack.c.bf16 %v1153_v54, %v1152_v53 }
 0x1ff   :  { %v1198_v36 = vpack.c.bf16 %v1151_v55, %v1150_v28  ;;  %v2844_v44 = vpop.f32.mrb[36].mxu1 }
 0x200   :  { %v1016_v57 = vadd.f32 %v2844_v44, %v3650_v52  ;;  %v1007_v58 = vpop.f32.mrb[37].mxu1 }
 0x201   :  { %v1008_v59 = vadd.f32 %v3650_v52, %v1007_v58  ;;  %v2845_v60 = vpop.f32.mrb[38].mxu1  ;;  %2918 = vmatprep.mubr.bf16.mxu0 %v1198_v36  ;;  %2998 = vmatprep.mubr.bf16.mxu1 %v1198_v36 }
 0x202   :  { %v1019_v61 = vadd.f32 %v2845_v60, %v3650_v52  ;;  %v1010_v62 = vpop.f32.mrb[39].mxu1  ;;  %2919 = vmatmul.mubr.bf16.gmra.mrb[96].mxu0 %v1199_v56  ;;  %2999 = vmatmul.mubr.bf16.gmra.mrb[92].mxu1 %v1199_v56  ;;  %v1156_v4 = vmax.f32 %v1016_v57, 0.0 }
 0x203   :  { %v1011_v0 = vadd.f32 %v3650_v52, %v1010_v62  ;;  %v1154_v46 = vmax.f32 %v1008_v59, 0.0 }
 0x204   :  { %v1157_v5 = vmax.f32 %v1019_v61, 0.0 }
 0x205   :  { %v1155_v6 = vmax.f32 %v1011_v0, 0.0 }
 0x206   :  { %v1201_v7 = vpack.c.bf16 %v1157_v5, %v1156_v4 }
 0x207   :  { %v1200_v8 = vpack.c.bf16 %v1155_v6, %v1154_v46  ;;  %v2848_v9 = vpop.f32.mrb[40].mxu1 }
 0x208   :  { %v1032_v11 = vadd.f32 %v2848_v9, %v3650_v52  ;;  %v1023_v12 = vpop.f32.mrb[41].mxu1 }
 0x209   :  { %v1024_v63 = vadd.f32 %v3650_v52, %v1023_v12  ;;  %v2849_v13 = vpop.f32.mrb[42].mxu1  ;;  %2922 = vmatprep.mubr.bf16.mxu0 %v1200_v8  ;;  %3002 = vmatprep.mubr.bf16.mxu1 %v1200_v8 }
 0x20a   :  { %v1035_v14 = vadd.f32 %v2849_v13, %v3650_v52  ;;  %v1026_v15 = vpop.f32.mrb[43].mxu1  ;;  %2923 = vmatmul.mubr.bf16.gmra.mrb[100].mxu0 %v1201_v7  ;;  %3003 = vmatmul.mubr.bf16.gmra.mrb[96].mxu1 %v1201_v7  ;;  %v1160_v17 = vmax.f32 %v1032_v11, 0.0 }
 0x20b   :  { %v1027_v16 = vadd.f32 %v3650_v52, %v1026_v15  ;;  %v1158_v20 = vmax.f32 %v1024_v63, 0.0 }
 0x20c   :  { %v1161_v18 = vmax.f32 %v1035_v14, 0.0 }
 0x20d   :  { %v1159_v21 = vmax.f32 %v1027_v16, 0.0 }
 0x20e   :  { %v1203_v22 = vpack.c.bf16 %v1161_v18, %v1160_v17 }
 0x20f   :  { %v1202_v23 = vpack.c.bf16 %v1159_v21, %v1158_v20  ;;  %v2852_v24 = vpop.f32.mrb[44].mxu1 }
 0x210   :  { %v1048_v42 = vadd.f32 %v2852_v24, %v3650_v52  ;;  %v1039_v25 = vpop.f32.mrb[45].mxu1 }
 0x211   :  { %v1040_v26 = vadd.f32 %v3650_v52, %v1039_v25  ;;  %v2853_v1 = vpop.f32.mrb[46].mxu1  ;;  %2926 = vmatprep.mubr.bf16.mxu0 %v1202_v23  ;;  %3006 = vmatprep.mubr.bf16.mxu1 %v1202_v23 }
 0x212   :  { %v1051_v27 = vadd.f32 %v2853_v1, %v3650_v52  ;;  %v1042_v29 = vpop.f32.mrb[47].mxu1  ;;  %2927 = vmatmul.mubr.bf16.gmra.mrb[104].mxu0 %v1203_v22  ;;  %3007 = vmatmul.mubr.bf16.gmra.mrb[100].mxu1 %v1203_v22  ;;  %v1164_v31 = vmax.f32 %v1048_v42, 0.0 }
 0x213   :  { %v1043_v30 = vadd.f32 %v3650_v52, %v1042_v29  ;;  %v1162_v33 = vmax.f32 %v1040_v26, 0.0 }
 0x214   :  { %v1165_v32 = vmax.f32 %v1051_v27, 0.0 }
 0x215   :  { %v1163_v34 = vmax.f32 %v1043_v30, 0.0 }
 0x216   :  { %v1205_v35 = vpack.c.bf16 %v1165_v32, %v1164_v31  ;;  %v3742_v32 = vld [vmem:[%s4233_s6] ss:$0 sm:$0xff]  ;;  %s3283_s6 = smov [#allocation2]  }
 0x217   :  { %v1204_v37 = vpack.c.bf16 %v1163_v34, %v1162_v33  ;;  %v2856_v38 = vpop.f32.mrb[48].mxu1 }
 0x218   :  { %v1064_v10 = vadd.f32 %v2856_v38, %v3650_v52  ;;  %v1055_v39 = vpop.f32.mrb[49].mxu1 }
 0x219   :  { %v1056_v40 = vadd.f32 %v3650_v52, %v1055_v39  ;;  %v2857_v19 = vpop.f32.mrb[50].mxu1  ;;  %2930 = vmatprep.mubr.bf16.mxu0 %v1204_v37  ;;  %3010 = vmatprep.mubr.bf16.mxu1 %v1204_v37 }
 0x21a   :  { %v1067_v41 = vadd.f32 %v2857_v19, %v3650_v52  ;;  %v1058_v43 = vpop.f32.mrb[51].mxu1  ;;  %2931 = vmatmul.mubr.bf16.gmra.mrb[108].mxu0 %v1205_v35  ;;  %3011 = vmatmul.mubr.bf16.gmra.mrb[104].mxu1 %v1205_v35  ;;  %v1168_v47 = vmax.f32 %v1064_v10, 0.0 }
 0x21b   :  { %v1059_v45 = vadd.f32 %v3650_v52, %v1058_v43  ;;  %v1166_v49 = vmax.f32 %v1056_v40, 0.0 }
 0x21c   :  { %v1169_v48 = vmax.f32 %v1067_v41, 0.0 }
 0x21d   :  { %v1167_v50 = vmax.f32 %v1059_v45, 0.0 }
 0x21e   :  { %v1207_v51 = vpack.c.bf16 %v1169_v48, %v1168_v47 }
 0x21f   :  { %v1206_v53 = vpack.c.bf16 %v1167_v50, %v1166_v49  ;;  %v2860_v54 = vpop.f32.mrb[52].mxu1 }
 0x220   :  { %v1080_v28 = vadd.f32 %v2860_v54, %v3650_v52  ;;  %v1071_v55 = vpop.f32.mrb[53].mxu1 }
 0x221   :  { %v1072_v56 = vadd.f32 %v3650_v52, %v1071_v55  ;;  %v2861_v36 = vpop.f32.mrb[54].mxu1  ;;  %2934 = vmatprep.mubr.bf16.mxu0 %v1206_v53  ;;  %3014 = vmatprep.mubr.bf16.mxu1 %v1206_v53 }
 0x222   :  { %v1083_v44 = vadd.f32 %v2861_v36, %v3650_v52  ;;  %v1074_v57 = vpop.f32.mrb[55].mxu1  ;;  %2935 = vmatmul.mubr.bf16.gmra.mrb[112].mxu0 %v1207_v51  ;;  %3015 = vmatmul.mubr.bf16.gmra.mrb[108].mxu1 %v1207_v51  ;;  %v1172_v59 = vmax.f32 %v1080_v28, 0.0 }
 0x223   :  { %v1075_v58 = vadd.f32 %v3650_v52, %v1074_v57  ;;  %v1170_v61 = vmax.f32 %v1072_v56, 0.0 }
 0x224   :  { %v1173_v60 = vmax.f32 %v1083_v44, 0.0 }
 0x225   :  { %v1171_v62 = vmax.f32 %v1075_v58, 0.0 }
 0x226   :  { %v1209_v0 = vpack.c.bf16 %v1173_v60, %v1172_v59 }
 0x227   :  { %v1208_v4 = vpack.c.bf16 %v1171_v62, %v1170_v61  ;;  %v2864_v5 = vpop.f32.mrb[56].mxu1 }
 0x228   :  { %v1096_v46 = vadd.f32 %v2864_v5, %v3650_v52  ;;  %v1087_v6 = vpop.f32.mrb[57].mxu1 }
 0x229   :  { %v1088_v7 = vadd.f32 %v3650_v52, %v1087_v6  ;;  %v2865_v8 = vpop.f32.mrb[58].mxu1  ;;  %2938 = vmatprep.mubr.bf16.mxu0 %v1208_v4  ;;  %3018 = vmatprep.mubr.bf16.mxu1 %v1208_v4 }
 0x22a   :  { %v1099_v9 = vadd.f32 %v2865_v8, %v3650_v52  ;;  %v1090_v11 = vpop.f32.mrb[59].mxu1  ;;  %2939 = vmatmul.mubr.bf16.gmra.mrb[116].mxu0 %v1209_v0  ;;  %3019 = vmatmul.mubr.bf16.gmra.mrb[112].mxu1 %v1209_v0  ;;  %v1176_v63 = vmax.f32 %v1096_v46, 0.0 }
 0x22b   :  { %v1091_v12 = vadd.f32 %v3650_v52, %v1090_v11  ;;  %v1174_v14 = vmax.f32 %v1088_v7, 0.0 }
 0x22c   :  { %v1177_v13 = vmax.f32 %v1099_v9, 0.0 }
 0x22d   :  { %v1175_v15 = vmax.f32 %v1091_v12, 0.0 }
 0x22e   :  { %v1211_v16 = vpack.c.bf16 %v1177_v13, %v1176_v63 }
 0x22f   :  { %v1210_v17 = vpack.c.bf16 %v1175_v15, %v1174_v14  ;;  %v2868_v18 = vpop.f32.mrb[60].mxu1 }
 0x230   :  { %v1112_v20 = vadd.f32 %v2868_v18, %v3650_v52  ;;  %v1103_v21 = vpop.f32.mrb[61].mxu1 }
 0x231   :  { %v1104_v22 = vadd.f32 %v3650_v52, %v1103_v21  ;;  %v2869_v23 = vpop.f32.mrb[62].mxu1  ;;  %2942 = vmatprep.mubr.bf16.mxu0 %v1210_v17  ;;  %3022 = vmatprep.mubr.bf16.mxu1 %v1210_v17 }
 0x232   :  { %v1115_v24 = vadd.f32 %v2869_v23, %v3650_v52  ;;  %v1106_v42 = vpop.f32.mrb[63].mxu1  ;;  %2943 = vmatmul.mubr.bf16.gmra.mrb[120].mxu0 %v1211_v16  ;;  %3023 = vmatmul.mubr.bf16.gmra.mrb[116].mxu1 %v1211_v16  ;;  %v1180_v26 = vmax.f32 %v1112_v20, 0.0 }
 0x233   :  { %v1107_v25 = vadd.f32 %v3650_v52, %v1106_v42  ;;  %v1178_v27 = vmax.f32 %v1104_v22, 0.0 }
 0x234   :  { %v1181_v1 = vmax.f32 %v1115_v24, 0.0 }
 0x235   :  { %v1179_v29 = vmax.f32 %v1107_v25, 0.0 }
 0x236   :  { %v1213_v30 = vpack.c.bf16 %v1181_v1, %v1180_v26 }
 0x237   :  { %v1212_v31 = vpack.c.bf16 %v1179_v29, %v1178_v27 }
 0x239   :  { %2946 = vmatprep.mubr.bf16.mxu0 %v1212_v31  ;;  %3026 = vmatprep.mubr.bf16.mxu1 %v1212_v31 }
 0x23a   :  { %2947 = vmatmul.mubr.bf16.gmra.mrb[124].mxu0 %v1213_v30  ;;  %3027 = vmatmul.mubr.bf16.gmra.mrb[120].mxu1 %v1213_v30 }
 0x23b   :  { %2966 = vmatprep.mubr.bf16.mxu0 %v3658_v3 }
 0x242   :  { %2967 = vmatmul.mubr.bf16.vlgmr.msra.gmra.mrb[128].mxu0 %v3656_v2  ;;  %v3751_v2 = vld [vmem:[%s4235_s8] ss:$0 sm:$0xff]  ;;  %s2451_s8 = sshll.u32 %s3283_s6, 4  ;;  %s2452_s8 = int_to_ptr.vmem [resolvable:$true] %s2451_s8 }
 0x243   :  { %s3235_s1 = scalar_lea.vmem %s2452_s8, 8192  ;;  %p3240_p1 = scmp.lt.s32.totalorder %s2452_s8, %s2452_s8 }
 0x244   :  { %p3236_p0 = scmp.ne.s32.totalorder %s2452_s8, %s3235_s1  ;;  %p3241_p2 = scmp.lt.s32.totalorder %s3235_s1, %s3235_s1 }
 0x246   :  { %p3242_p3 = por %p3241_p2, %p3240_p1 }
 0x248   :  { %p3243_p4 = pnand %p3242_p3, %p3236_p0 }
 0x295   :  { %v2888_v52 = vpop.f32.mrb[64].mxu0 }
 0x296   :  { %v1328_v33 = vadd.f32 %v2888_v52, %v3742_v32  ;;  %v1319_v34 = vpop.f32.mrb[65].mxu0 }
 0x297   :  { %v1320_v35 = vadd.f32 %v3742_v32, %v1319_v34  ;;  %v2889_v37 = vpop.f32.mrb[66].mxu0 }
 0x298   :  { %1576 = vst [vmem:[#allocation2 + $0x10] sm:$0xff] %v1328_v33  ;;  %v1331_v38 = vadd.f32 %v2889_v37, %v3742_v32  ;;  %v1322_v10 = vpop.f32.mrb[67].mxu0 }
 0x299   :  { %1574 = vst [vmem:[#allocation2] sm:$0xff] %v1320_v35  ;;  %v1323_v3 = vadd.f32 %v3742_v32, %v1322_v10 }
 0x29a   :  { %1577 = vst [vmem:[#allocation2 + $0x18] sm:$0xff] %v1331_v38 }
 0x29b   :  { %1575 = vst [vmem:[#allocation2 + $0x8] sm:$0xff] %v1323_v3 }
 0x29d   :  { %v2892_v39 = vpop.f32.mrb[68].mxu0  ;;  %v2972_v40 = vpop.f32.mrb[64].mxu1 }
 0x29e   :  { %v1344_v19 = vadd.f32 %v2892_v39, %v3742_v32  ;;  %v3755_v41 = vadd.f32 %v2972_v40, %v3751_v2  ;;  %v1335_v43 = vpop.f32.mrb[69].mxu0  ;;  %v1759_v45 = vpop.f32.mrb[65].mxu1 }
 0x29f   :  { %v1336_v47 = vadd.f32 %v3742_v32, %v1335_v43  ;;  %v2893_v48 = vpop.f32.mrb[70].mxu0  ;;  %v2973_v49 = vpop.f32.mrb[66].mxu1  ;;  %v3759_v50 = vadd.f32 %v3751_v2, %v1759_v45 }
 0x2a0   :  { %1580 = vst [vmem:[#allocation2 + $0x30] sm:$0xff] %v1344_v19  ;;  %v1347_v51 = vadd.f32 %v2893_v48, %v3742_v32  ;;  %v3763_v53 = vadd.f32 %v2973_v49, %v3751_v2  ;;  %v1338_v54 = vpop.f32.mrb[71].mxu0  ;;  %v1762_v28 = vpop.f32.mrb[67].mxu1  ;;  %v2004_v55 = vmul.f32 %v3755_v41, %v3755_v41 }
 0x2a1   :  { %1578 = vst [vmem:[#allocation2 + $0x20] sm:$0xff] %v1336_v47  ;;  %v1339_v56 = vadd.f32 %v3742_v32, %v1338_v54  ;;  %v3769_v36 = vadd.f32 %v3751_v2, %v1762_v28  ;;  %v2002_v57 = vmul.f32 %v3759_v50, %v3759_v50 }
 0x2a2   :  { %1581 = vst [vmem:[#allocation2 + $0x38] sm:$0xff] %v1347_v51  ;;  %2074 = vadd.xlane.f32.xlu0 %v2004_v55  ;;  %v2005_v44 = vmul.f32 %v3763_v53, %v3763_v53 }
 0x2a3   :  { %1579 = vst [vmem:[#allocation2 + $0x28] sm:$0xff] %v1339_v56  ;;  %v2003_v4 = vmul.f32 %v3769_v36, %v3769_v36 }
 0x2a4   :  { %2076 = vadd.xlane.f32.xlu1 %v2005_v44 }
 0x2a5   :  { %v2896_v58 = vpop.f32.mrb[72].mxu0  ;;  %v2976_v59 = vpop.f32.mrb[68].mxu1 }
 0x2a6   :  { %v1360_v60 = vadd.f32 %v2896_v58, %v3742_v32  ;;  %v3777_v61 = vadd.f32 %v2976_v59, %v3751_v2  ;;  %v1775_v62 = vpop.f32.mrb[69].mxu1  ;;  %2070 = vadd.xlane.f32.xlu0 %v2002_v57  ;;  %v1351_v0 = vpop.f32.mrb[73].mxu0 }
 0x2a7   :  { %v1352_v5 = vadd.f32 %v3742_v32, %v1351_v0  ;;  %v2897_v46 = vpop.f32.mrb[74].mxu0  ;;  %v2977_v6 = vpop.f32.mrb[70].mxu1  ;;  %v3783_v7 = vadd.f32 %v3751_v2, %v1775_v62 }
 0x2a8   :  { %1584 = vst [vmem:[#allocation2 + $0x50] sm:$0xff] %v1360_v60  ;;  %v1363_v8 = vadd.f32 %v2897_v46, %v3742_v32  ;;  %v3787_v9 = vadd.f32 %v2977_v6, %v3751_v2  ;;  %v1778_v11 = vpop.f32.mrb[71].mxu1  ;;  %2072 = vadd.xlane.f32.xlu1 %v2003_v4  ;;  %v1354_v12 = vpop.f32.mrb[75].mxu0  ;;  %v2008_v63 = vmul.f32 %v3777_v61, %v3777_v61 }
 0x2a9   :  { %1582 = vst [vmem:[#allocation2 + $0x40] sm:$0xff] %v1352_v5  ;;  %v1355_v13 = vadd.f32 %v3742_v32, %v1354_v12  ;;  %v3793_v14 = vadd.f32 %v3751_v2, %v1778_v11  ;;  %v2006_v16 = vmul.f32 %v3783_v7, %v3783_v7 }
 0x2aa   :  { %1585 = vst [vmem:[#allocation2 + $0x58] sm:$0xff] %v1363_v8  ;;  %2082 = vadd.xlane.f32.xlu0 %v2008_v63  ;;  %v2009_v15 = vmul.f32 %v3787_v9, %v3787_v9 }
 0x2ab   :  { %1583 = vst [vmem:[#allocation2 + $0x48] sm:$0xff] %v1355_v13  ;;  %v2007_v24 = vmul.f32 %v3793_v14, %v3793_v14 }
 0x2ac   :  { %2084 = vadd.xlane.f32.xlu1 %v2009_v15 }
 0x2ad   :  { %v2900_v17 = vpop.f32.mrb[76].mxu0  ;;  %v2980_v18 = vpop.f32.mrb[72].mxu1 }
 0x2ae   :  { %v1376_v20 = vadd.f32 %v2900_v17, %v3742_v32  ;;  %v3801_v21 = vadd.f32 %v2980_v18, %v3751_v2  ;;  %v1791_v22 = vpop.f32.mrb[73].mxu1  ;;  %2078 = vadd.xlane.f32.xlu0 %v2006_v16  ;;  %v1367_v23 = vpop.f32.mrb[77].mxu0 }
 0x2af   :  { %v1368_v42 = vadd.f32 %v3742_v32, %v1367_v23  ;;  %v2901_v25 = vpop.f32.mrb[78].mxu0  ;;  %v2981_v26 = vpop.f32.mrb[74].mxu1  ;;  %v3807_v1 = vadd.f32 %v3751_v2, %v1791_v22 }
 0x2b0   :  { %1588 = vst [vmem:[#allocation2 + $0x70] sm:$0xff] %v1376_v20  ;;  %v1379_v27 = vadd.f32 %v2901_v25, %v3742_v32  ;;  %v3811_v29 = vadd.f32 %v2981_v26, %v3751_v2  ;;  %v1794_v30 = vpop.f32.mrb[75].mxu1  ;;  %2080 = vadd.xlane.f32.xlu1 %v2007_v24  ;;  %v1370_v31 = vpop.f32.mrb[79].mxu0  ;;  %v2012_v52 = vmul.f32 %v3801_v21, %v3801_v21 }
 0x2b1   :  { %1586 = vst [vmem:[#allocation2 + $0x60] sm:$0xff] %v1368_v42  ;;  %v1371_v33 = vadd.f32 %v3742_v32, %v1370_v31  ;;  %v3817_v34 = vadd.f32 %v3751_v2, %v1794_v30  ;;  %v2010_v37 = vmul.f32 %v3807_v1, %v3807_v1 }
 0x2b2   :  { %1589 = vst [vmem:[#allocation2 + $0x78] sm:$0xff] %v1379_v27  ;;  %2090 = vadd.xlane.f32.xlu0 %v2012_v52  ;;  %v2013_v35 = vmul.f32 %v3811_v29, %v3811_v29 }
 0x2b3   :  { %1587 = vst [vmem:[#allocation2 + $0x68] sm:$0xff] %v1371_v33  ;;  %v2011_v43 = vmul.f32 %v3817_v34, %v3817_v34 }
 0x2b4   :  { %2092 = vadd.xlane.f32.xlu1 %v2013_v35 }
 0x2b5   :  { %v2904_v38 = vpop.f32.mrb[80].mxu0  ;;  %v2984_v10 = vpop.f32.mrb[76].mxu1 }
 0x2b6   :  { %v1392_v3 = vadd.f32 %v2904_v38, %v3742_v32  ;;  %v3825_v39 = vadd.f32 %v2984_v10, %v3751_v2  ;;  %v1807_v40 = vpop.f32.mrb[77].mxu1  ;;  %2086 = vadd.xlane.f32.xlu0 %v2010_v37  ;;  %v1383_v19 = vpop.f32.mrb[81].mxu0 }
 0x2b7   :  { %v1384_v45 = vadd.f32 %v3742_v32, %v1383_v19  ;;  %v2905_v47 = vpop.f32.mrb[82].mxu0  ;;  %v2985_v48 = vpop.f32.mrb[78].mxu1  ;;  %v3831_v49 = vadd.f32 %v3751_v2, %v1807_v40 }
 0x2b8   :  { %1592 = vst [vmem:[#allocation2 + $0x90] sm:$0xff] %v1392_v3  ;;  %v1395_v51 = vadd.f32 %v2905_v47, %v3742_v32  ;;  %v3835_v54 = vadd.f32 %v2985_v48, %v3751_v2  ;;  %v1810_v28 = vpop.f32.mrb[79].mxu1  ;;  %2088 = vadd.xlane.f32.xlu1 %v2011_v43  ;;  %v1386_v55 = vpop.f32.mrb[83].mxu0  ;;  %v2016_v56 = vmul.f32 %v3825_v39, %v3825_v39 }
 0x2b9   :  { %1590 = vst [vmem:[#allocation2 + $0x80] sm:$0xff] %v1384_v45  ;;  %v1387_v44 = vadd.f32 %v3742_v32, %v1386_v55  ;;  %v3841_v57 = vadd.f32 %v3751_v2, %v1810_v28  ;;  %v2014_v59 = vmul.f32 %v3831_v49, %v3831_v49 }
 0x2ba   :  { %1593 = vst [vmem:[#allocation2 + $0x98] sm:$0xff] %v1395_v51  ;;  %2098 = vadd.xlane.f32.xlu0 %v2016_v56  ;;  %v2017_v58 = vmul.f32 %v3835_v54, %v3835_v54 }
 0x2bb   :  { %1591 = vst [vmem:[#allocation2 + $0x88] sm:$0xff] %v1387_v44  ;;  %v2015_v6 = vmul.f32 %v3841_v57, %v3841_v57 }
 0x2bc   :  { %2100 = vadd.xlane.f32.xlu1 %v2017_v58 }
 0x2bd   :  { %v2908_v60 = vpop.f32.mrb[84].mxu0  ;;  %v2988_v62 = vpop.f32.mrb[80].mxu1 }
 0x2be   :  { %v1408_v0 = vadd.f32 %v2908_v60, %v3742_v32  ;;  %v3849_v4 = vadd.f32 %v2988_v62, %v3751_v2  ;;  %v1823_v5 = vpop.f32.mrb[81].mxu1  ;;  %2094 = vadd.xlane.f32.xlu0 %v2014_v59  ;;  %v1399_v46 = vpop.f32.mrb[85].mxu0 }
 0x2bf   :  { %v1400_v8 = vadd.f32 %v3742_v32, %v1399_v46  ;;  %v2909_v11 = vpop.f32.mrb[86].mxu0  ;;  %v2989_v12 = vpop.f32.mrb[82].mxu1  ;;  %v3855_v63 = vadd.f32 %v3751_v2, %v1823_v5 }
 0x2c0   :  { %1596 = vst [vmem:[#allocation2 + $0xb0] sm:$0xff] %v1408_v0  ;;  %v1411_v13 = vadd.f32 %v2909_v11, %v3742_v32  ;;  %v3859_v15 = vadd.f32 %v2989_v12, %v3751_v2  ;;  %v1826_v16 = vpop.f32.mrb[83].mxu1  ;;  %2096 = vadd.xlane.f32.xlu1 %v2015_v6  ;;  %v1402_v17 = vpop.f32.mrb[87].mxu0  ;;  %v2020_v18 = vmul.f32 %v3849_v4, %v3849_v4 }
 0x2c1   :  { %1594 = vst [vmem:[#allocation2 + $0xa0] sm:$0xff] %v1400_v8  ;;  %v1403_v20 = vadd.f32 %v3742_v32, %v1402_v17  ;;  %v3865_v22 = vadd.f32 %v3751_v2, %v1826_v16  ;;  %v2018_v24 = vmul.f32 %v3855_v63, %v3855_v63 }
 0x2c2   :  { %1597 = vst [vmem:[#allocation2 + $0xb8] sm:$0xff] %v1411_v13  ;;  %2106 = vadd.xlane.f32.xlu0 %v2020_v18  ;;  %v2021_v23 = vmul.f32 %v3859_v15, %v3859_v15 }
 0x2c3   :  { %1595 = vst [vmem:[#allocation2 + $0xa8] sm:$0xff] %v1403_v20  ;;  %v2019_v52 = vmul.f32 %v3865_v22, %v3865_v22 }
 0x2c4   :  { %2108 = vadd.xlane.f32.xlu1 %v2021_v23 }
 0x2c5   :  { %v2912_v42 = vpop.f32.mrb[88].mxu0  ;;  %v2992_v25 = vpop.f32.mrb[84].mxu1 }
 0x2c6   :  { %v1424_v26 = vadd.f32 %v2912_v42, %v3742_v32  ;;  %v3873_v27 = vadd.f32 %v2992_v25, %v3751_v2  ;;  %v1839_v30 = vpop.f32.mrb[85].mxu1  ;;  %2102 = vadd.xlane.f32.xlu0 %v2018_v24  ;;  %v1415_v31 = vpop.f32.mrb[89].mxu0 }
 0x2c7   :  { %v1416_v33 = vadd.f32 %v3742_v32, %v1415_v31  ;;  %v2913_v35 = vpop.f32.mrb[90].mxu0  ;;  %v2993_v37 = vpop.f32.mrb[86].mxu1  ;;  %v3879_v38 = vadd.f32 %v3751_v2, %v1839_v30 }
 0x2c8   :  { %1600 = vst [vmem:[#allocation2 + $0xd0] sm:$0xff] %v1424_v26  ;;  %v1427_v10 = vadd.f32 %v2913_v35, %v3742_v32  ;;  %v3883_v3 = vadd.f32 %v2993_v37, %v3751_v2  ;;  %v1842_v40 = vpop.f32.mrb[87].mxu1  ;;  %2104 = vadd.xlane.f32.xlu1 %v2019_v52  ;;  %v1418_v19 = vpop.f32.mrb[91].mxu0  ;;  %v2024_v43 = vmul.f32 %v3873_v27, %v3873_v27 }
 0x2c9   :  { %1598 = vst [vmem:[#allocation2 + $0xc0] sm:$0xff] %v1416_v33  ;;  %v1419_v45 = vadd.f32 %v3742_v32, %v1418_v19  ;;  %v3889_v47 = vadd.f32 %v3751_v2, %v1842_v40  ;;  %v2022_v51 = vmul.f32 %v3879_v38, %v3879_v38 }
 0x2ca   :  { %1601 = vst [vmem:[#allocation2 + $0xd8] sm:$0xff] %v1427_v10  ;;  %2114 = vadd.xlane.f32.xlu0 %v2024_v43  ;;  %v2025_v48 = vmul.f32 %v3883_v3, %v3883_v3 }
 0x2cb   :  { %1599 = vst [vmem:[#allocation2 + $0xc8] sm:$0xff] %v1419_v45  ;;  %v2023_v60 = vmul.f32 %v3889_v47, %v3889_v47 }
 0x2cc   :  { %2116 = vadd.xlane.f32.xlu1 %v2025_v48 }
 0x2cd   :  { %v2916_v28 = vpop.f32.mrb[92].mxu0  ;;  %v2996_v55 = vpop.f32.mrb[88].mxu1 }
 0x2ce   :  { %v1440_v56 = vadd.f32 %v2916_v28, %v3742_v32  ;;  %v3897_v44 = vadd.f32 %v2996_v55, %v3751_v2  ;;  %v1855_v58 = vpop.f32.mrb[89].mxu1  ;;  %2110 = vadd.xlane.f32.xlu0 %v2022_v51  ;;  %v1431_v59 = vpop.f32.mrb[93].mxu0 }
 0x2cf   :  { %v1432_v62 = vadd.f32 %v3742_v32, %v1431_v59  ;;  %v2917_v0 = vpop.f32.mrb[94].mxu0  ;;  %v2997_v5 = vpop.f32.mrb[90].mxu1  ;;  %v3903_v46 = vadd.f32 %v3751_v2, %v1855_v58 }
 0x2d0   :  { %1604 = vst [vmem:[#allocation2 + $0xf0] sm:$0xff] %v1440_v56  ;;  %v1443_v6 = vadd.f32 %v2917_v0, %v3742_v32  ;;  %v3907_v8 = vadd.f32 %v2997_v5, %v3751_v2  ;;  %v1858_v11 = vpop.f32.mrb[91].mxu1  ;;  %2112 = vadd.xlane.f32.xlu1 %v2023_v60  ;;  %v1434_v12 = vpop.f32.mrb[95].mxu0  ;;  %v2028_v13 = vmul.f32 %v3897_v44, %v3897_v44 }
 0x2d1   :  { %1602 = vst [vmem:[#allocation2 + $0xe0] sm:$0xff] %v1432_v62  ;;  %v1435_v16 = vadd.f32 %v3742_v32, %v1434_v12  ;;  %v3913_v17 = vadd.f32 %v3751_v2, %v1858_v11  ;;  %v2026_v20 = vmul.f32 %v3903_v46, %v3903_v46 }
 0x2d2   :  { %1605 = vst [vmem:[#allocation2 + $0xf8] sm:$0xff] %v1443_v6  ;;  %2122 = vadd.xlane.f32.xlu0 %v2028_v13  ;;  %v2029_v18 = vmul.f32 %v3907_v8, %v3907_v8 }
 0x2d3   :  { %1603 = vst [vmem:[#allocation2 + $0xe8] sm:$0xff] %v1435_v16  ;;  %v2027_v31 = vmul.f32 %v3913_v17, %v3913_v17 }
 0x2d4   :  { %2124 = vadd.xlane.f32.xlu1 %v2029_v18 }
 0x2d5   :  { %v2920_v23 = vpop.f32.mrb[96].mxu0  ;;  %v3000_v24 = vpop.f32.mrb[92].mxu1 }
 0x2d6   :  { %v1456_v42 = vadd.f32 %v2920_v23, %v3742_v32  ;;  %v3921_v25 = vadd.f32 %v3000_v24, %v3751_v2  ;;  %v1871_v26 = vpop.f32.mrb[93].mxu1  ;;  %2118 = vadd.xlane.f32.xlu0 %v2026_v20  ;;  %v1447_v30 = vpop.f32.mrb[97].mxu0 }
 0x2d7   :  { %v1448_v52 = vadd.f32 %v3742_v32, %v1447_v30  ;;  %v2921_v33 = vpop.f32.mrb[98].mxu0  ;;  %v3001_v35 = vpop.f32.mrb[94].mxu1  ;;  %v3927_v37 = vadd.f32 %v3751_v2, %v1871_v26 }
 0x2d8   :  { %1608 = vst [vmem:[#allocation2 + $0x110] sm:$0xff] %v1456_v42  ;;  %v1459_v10 = vadd.f32 %v2921_v33, %v3742_v32  ;;  %v3931_v40 = vadd.f32 %v3001_v35, %v3751_v2  ;;  %v1874_v19 = vpop.f32.mrb[95].mxu1  ;;  %2120 = vadd.xlane.f32.xlu1 %v2027_v31  ;;  %v1450_v43 = vpop.f32.mrb[99].mxu0  ;;  %v2032_v45 = vmul.f32 %v3921_v25, %v3921_v25 }
 0x2d9   :  { %1606 = vst [vmem:[#allocation2 + $0x100] sm:$0xff] %v1448_v52  ;;  %v1451_v48 = vadd.f32 %v3742_v32, %v1450_v43  ;;  %v3937_v51 = vadd.f32 %v3751_v2, %v1874_v19  ;;  %v2030_v55 = vmul.f32 %v3927_v37, %v3927_v37 }
 0x2da   :  { %1609 = vst [vmem:[#allocation2 + $0x118] sm:$0xff] %v1459_v10  ;;  %2130 = vadd.xlane.f32.xlu0 %v2032_v45  ;;  %v2033_v28 = vmul.f32 %v3931_v40, %v3931_v40 }
 0x2db   :  { %1607 = vst [vmem:[#allocation2 + $0x108] sm:$0xff] %v1451_v48  ;;  %v2031_v5 = vmul.f32 %v3937_v51, %v3937_v51 }
 0x2dc   :  { %2132 = vadd.xlane.f32.xlu1 %v2033_v28 }
 0x2dd   :  { %v2924_v56 = vpop.f32.mrb[100].mxu0  ;;  %v3004_v58 = vpop.f32.mrb[96].mxu1 }
 0x2de   :  { %v1472_v59 = vadd.f32 %v2924_v56, %v3742_v32  ;;  %v3945_v60 = vadd.f32 %v3004_v58, %v3751_v2  ;;  %v1887_v62 = vpop.f32.mrb[97].mxu1  ;;  %2126 = vadd.xlane.f32.xlu0 %v2030_v55  ;;  %v1463_v0 = vpop.f32.mrb[101].mxu0 }
 0x2df   :  { %v1464_v6 = vadd.f32 %v3742_v32, %v1463_v0  ;;  %v2925_v11 = vpop.f32.mrb[102].mxu0  ;;  %v3005_v12 = vpop.f32.mrb[98].mxu1  ;;  %v3951_v13 = vadd.f32 %v3751_v2, %v1887_v62 }
 0x2e0   :  { %1612 = vst [vmem:[#allocation2 + $0x130] sm:$0xff] %v1472_v59  ;;  %v1475_v16 = vadd.f32 %v2925_v11, %v3742_v32  ;;  %v3955_v18 = vadd.f32 %v3005_v12, %v3751_v2  ;;  %v1890_v20 = vpop.f32.mrb[99].mxu1  ;;  %2128 = vadd.xlane.f32.xlu1 %v2031_v5  ;;  %v1466_v23 = vpop.f32.mrb[103].mxu0  ;;  %v2036_v24 = vmul.f32 %v3945_v60, %v3945_v60 }
 0x2e1   :  { %1610 = vst [vmem:[#allocation2 + $0x120] sm:$0xff] %v1464_v6  ;;  %v1467_v42 = vadd.f32 %v3742_v32, %v1466_v23  ;;  %v3961_v26 = vadd.f32 %v3751_v2, %v1890_v20  ;;  %v2034_v31 = vmul.f32 %v3951_v13, %v3951_v13 }
 0x2e2   :  { %1613 = vst [vmem:[#allocation2 + $0x138] sm:$0xff] %v1475_v16  ;;  %2138 = vadd.xlane.f32.xlu0 %v2036_v24  ;;  %v2037_v30 = vmul.f32 %v3955_v18, %v3955_v18 }
 0x2e3   :  { %1611 = vst [vmem:[#allocation2 + $0x128] sm:$0xff] %v1467_v42  ;;  %v2035_v45 = vmul.f32 %v3961_v26, %v3961_v26 }
 0x2e4   :  { %2140 = vadd.xlane.f32.xlu1 %v2037_v30 }
 0x2e5   :  { %v2928_v52 = vpop.f32.mrb[104].mxu0  ;;  %v3008_v33 = vpop.f32.mrb[100].mxu1 }
 0x2e6   :  { %v1488_v35 = vadd.f32 %v2928_v52, %v3742_v32  ;;  %v3969_v10 = vadd.f32 %v3008_v33, %v3751_v2  ;;  %v1903_v19 = vpop.f32.mrb[101].mxu1  ;;  %2134 = vadd.xlane.f32.xlu0 %v2034_v31  ;;  %v1479_v43 = vpop.f32.mrb[105].mxu0 }
 0x2e7   :  { %v1480_v48 = vadd.f32 %v3742_v32, %v1479_v43  ;;  %v2929_v28 = vpop.f32.mrb[106].mxu0  ;;  %v3009_v55 = vpop.f32.mrb[102].mxu1  ;;  %v3975_v56 = vadd.f32 %v3751_v2, %v1903_v19 }
 0x2e8   :  { %1616 = vst [vmem:[#allocation2 + $0x150] sm:$0xff] %v1488_v35  ;;  %v1491_v58 = vadd.f32 %v2929_v28, %v3742_v32  ;;  %v3979_v59 = vadd.f32 %v3009_v55, %v3751_v2  ;;  %v1906_v62 = vpop.f32.mrb[103].mxu1  ;;  %2136 = vadd.xlane.f32.xlu1 %v2035_v45  ;;  %v1482_v0 = vpop.f32.mrb[107].mxu0  ;;  %v2040_v5 = vmul.f32 %v3969_v10, %v3969_v10 }
 0x2e9   :  { %1614 = vst [vmem:[#allocation2 + $0x140] sm:$0xff] %v1480_v48  ;;  %v1483_v6 = vadd.f32 %v3742_v32, %v1482_v0  ;;  %v3985_v11 = vadd.f32 %v3751_v2, %v1906_v62  ;;  %v2038_v16 = vmul.f32 %v3975_v56, %v3975_v56 }
 0x2ea   :  { %1617 = vst [vmem:[#allocation2 + $0x158] sm:$0xff] %v1491_v58  ;;  %2146 = vadd.xlane.f32.xlu0 %v2040_v5  ;;  %v2041_v12 = vmul.f32 %v3979_v59, %v3979_v59 }
 0x2eb   :  { %1615 = vst [vmem:[#allocation2 + $0x148] sm:$0xff] %v1483_v6  ;;  %v2039_v52 = vmul.f32 %v3985_v11, %v3985_v11 }
 0x2ec   :  { %2148 = vadd.xlane.f32.xlu1 %v2041_v12 }
 0x2ed   :  { %v2932_v20 = vpop.f32.mrb[108].mxu0  ;;  %v3012_v23 = vpop.f32.mrb[104].mxu1 }
 0x2ee   :  { %v1504_v24 = vadd.f32 %v2932_v20, %v3742_v32  ;;  %v3993_v42 = vadd.f32 %v3012_v23, %v3751_v2  ;;  %v1919_v30 = vpop.f32.mrb[105].mxu1  ;;  %2142 = vadd.xlane.f32.xlu0 %v2038_v16  ;;  %v1495_v31 = vpop.f32.mrb[109].mxu0 }
 0x2ef   :  { %v1496_v33 = vadd.f32 %v3742_v32, %v1495_v31  ;;  %v2933_v35 = vpop.f32.mrb[110].mxu0  ;;  %v3013_v19 = vpop.f32.mrb[106].mxu1  ;;  %v3999_v43 = vadd.f32 %v3751_v2, %v1919_v30 }
 0x2f0   :  { %1620 = vst [vmem:[#allocation2 + $0x170] sm:$0xff] %v1504_v24  ;;  %v1507_v45 = vadd.f32 %v2933_v35, %v3742_v32  ;;  %v4003_v48 = vadd.f32 %v3013_v19, %v3751_v2  ;;  %v1922_v28 = vpop.f32.mrb[107].mxu1  ;;  %2144 = vadd.xlane.f32.xlu1 %v2039_v52  ;;  %v1498_v55 = vpop.f32.mrb[111].mxu0  ;;  %v2044_v58 = vmul.f32 %v3993_v42, %v3993_v42 }
 0x2f1   :  { %1618 = vst [vmem:[#allocation2 + $0x160] sm:$0xff] %v1496_v33  ;;  %v1499_v62 = vadd.f32 %v3742_v32, %v1498_v55  ;;  %v4009_v0 = vadd.f32 %v3751_v2, %v1922_v28  ;;  %v2042_v6 = vmul.f32 %v3999_v43, %v3999_v43 }
 0x2f2   :  { %1621 = vst [vmem:[#allocation2 + $0x178] sm:$0xff] %v1507_v45  ;;  %2154 = vadd.xlane.f32.xlu0 %v2044_v58  ;;  %v2045_v5 = vmul.f32 %v4003_v48, %v4003_v48 }
 0x2f3   :  { %1619 = vst [vmem:[#allocation2 + $0x168] sm:$0xff] %v1499_v62  ;;  %v2043_v31 = vmul.f32 %v4009_v0, %v4009_v0 }
 0x2f4   :  { %2156 = vadd.xlane.f32.xlu1 %v2045_v5 }
 0x2f5   :  { %v2936_v12 = vpop.f32.mrb[112].mxu0  ;;  %v3016_v16 = vpop.f32.mrb[108].mxu1 }
 0x2f6   :  { %v1520_v20 = vadd.f32 %v2936_v12, %v3742_v32  ;;  %v4017_v23 = vadd.f32 %v3016_v16, %v3751_v2  ;;  %v1935_v24 = vpop.f32.mrb[109].mxu1  ;;  %2150 = vadd.xlane.f32.xlu0 %v2042_v6  ;;  %v1511_v30 = vpop.f32.mrb[113].mxu0 }
 0x2f7   :  { %v1512_v52 = vadd.f32 %v3742_v32, %v1511_v30  ;;  %v2937_v33 = vpop.f32.mrb[114].mxu0  ;;  %v3017_v35 = vpop.f32.mrb[110].mxu1  ;;  %v4023_v19 = vadd.f32 %v3751_v2, %v1935_v24 }
 0x2f8   :  { %1624 = vst [vmem:[#allocation2 + $0x190] sm:$0xff] %v1520_v20  ;;  %v1523_v45 = vadd.f32 %v2937_v33, %v3742_v32  ;;  %v4027_v28 = vadd.f32 %v3017_v35, %v3751_v2  ;;  %v1938_v55 = vpop.f32.mrb[111].mxu1  ;;  %2152 = vadd.xlane.f32.xlu1 %v2043_v31  ;;  %v1514_v58 = vpop.f32.mrb[115].mxu0  ;;  %v2048_v62 = vmul.f32 %v4017_v23, %v4017_v23 }
 0x2f9   :  { %1622 = vst [vmem:[#allocation2 + $0x180] sm:$0xff] %v1512_v52  ;;  %v1515_v5 = vadd.f32 %v3742_v32, %v1514_v58  ;;  %v4033_v6 = vadd.f32 %v3751_v2, %v1938_v55  ;;  %v2046_v16 = vmul.f32 %v4023_v19, %v4023_v19 }
 0x2fa   :  { %1625 = vst [vmem:[#allocation2 + $0x198] sm:$0xff] %v1523_v45  ;;  %2162 = vadd.xlane.f32.xlu0 %v2048_v62  ;;  %v2049_v12 = vmul.f32 %v4027_v28, %v4027_v28 }
 0x2fb   :  { %4253 = vst [vmem:[#allocation8_spill] sm:$0xff] %v4033_v6  ;;  %1623 = vst [vmem:[#allocation2 + $0x188] sm:$0xff] %v1515_v5  ;;  %v2047_v35 = vmul.f32 %v4033_v6, %v4033_v6 }
 0x2fc   :  { %2164 = vadd.xlane.f32.xlu1 %v2049_v12 }
 0x2fd   :  { %v2940_v20 = vpop.f32.mrb[116].mxu0  ;;  %v3020_v24 = vpop.f32.mrb[112].mxu1 }
 0x2fe   :  { %v1536_v30 = vadd.f32 %v2940_v20, %v3742_v32  ;;  %v4041_v31 = vadd.f32 %v3020_v24, %v3751_v2  ;;  %v1951_v52 = vpop.f32.mrb[113].mxu1  ;;  %2158 = vadd.xlane.f32.xlu0 %v2046_v16  ;;  %v1527_v33 = vpop.f32.mrb[117].mxu0 }
 0x2ff   :  { %v1528_v45 = vadd.f32 %v3742_v32, %v1527_v33  ;;  %v2941_v55 = vpop.f32.mrb[118].mxu0  ;;  %v3021_v58 = vpop.f32.mrb[114].mxu1  ;;  %v4047_v62 = vadd.f32 %v3751_v2, %v1951_v52 }
 0x300   :  { %4254 = vst [vmem:[#allocation9_spill] sm:$0xff] %v4041_v31  ;;  %1628 = vst [vmem:[#allocation2 + $0x1b0] sm:$0xff] %v1536_v30  ;;  %v1539_v5 = vadd.f32 %v2941_v55, %v3742_v32  ;;  %v4051_v12 = vadd.f32 %v3021_v58, %v3751_v2  ;;  %v1954_v20 = vpop.f32.mrb[115].mxu1  ;;  %2160 = vadd.xlane.f32.xlu1 %v2047_v35  ;;  %v1530_v16 = vpop.f32.mrb[119].mxu0  ;;  %v2052_v24 = vmul.f32 %v4041_v31, %v4041_v31 }
 0x301   :  { %4255 = vst [vmem:[#allocation10_spill] sm:$0xff] %v4047_v62  ;;  %1626 = vst [vmem:[#allocation2 + $0x1a0] sm:$0xff] %v1528_v45  ;;  %v1531_v33 = vadd.f32 %v3742_v32, %v1530_v16  ;;  %v4057_v30 = vadd.f32 %v3751_v2, %v1954_v20  ;;  %v2050_v35 = vmul.f32 %v4047_v62, %v4047_v62 }
 0x302   :  { %4256 = vst [vmem:[#allocation11_spill] sm:$0xff] %v4051_v12  ;;  %1629 = vst [vmem:[#allocation2 + $0x1b8] sm:$0xff] %v1539_v5  ;;  %2170 = vadd.xlane.f32.xlu0 %v2052_v24  ;;  %v2053_v52 = vmul.f32 %v4051_v12, %v4051_v12 }
 0x303   :  { %4257 = vst [vmem:[#allocation12_spill] sm:$0xff] %v4057_v30  ;;  %1627 = vst [vmem:[#allocation2 + $0x1a8] sm:$0xff] %v1531_v33  ;;  %v2051_v16 = vmul.f32 %v4057_v30, %v4057_v30 }
 0x304   :  { %2172 = vadd.xlane.f32.xlu1 %v2053_v52 }
 0x305   :  { %v2944_v55 = vpop.f32.mrb[120].mxu0  ;;  %v3024_v58 = vpop.f32.mrb[116].mxu1 }
 0x306   :  { %v1552_v31 = vadd.f32 %v2944_v55, %v3742_v32  ;;  %v4065_v45 = vadd.f32 %v3024_v58, %v3751_v2  ;;  %v1967_v5 = vpop.f32.mrb[117].mxu1  ;;  %2166 = vadd.xlane.f32.xlu0 %v2050_v35  ;;  %v1543_v20 = vpop.f32.mrb[121].mxu0 }
 0x307   :  { %v1544_v24 = vadd.f32 %v3742_v32, %v1543_v20  ;;  %v2945_v33 = vpop.f32.mrb[122].mxu0  ;;  %v3025_v52 = vpop.f32.mrb[118].mxu1  ;;  %v4071_v62 = vadd.f32 %v3751_v2, %v1967_v5 }
 0x308   :  { %4258 = vst [vmem:[#allocation13_spill] sm:$0xff] %v4065_v45  ;;  %1632 = vst [vmem:[#allocation2 + $0x1d0] sm:$0xff] %v1552_v31  ;;  %v1555_v12 = vadd.f32 %v2945_v33, %v3742_v32  ;;  %v4075_v55 = vadd.f32 %v3025_v52, %v3751_v2  ;;  %v1970_v58 = vpop.f32.mrb[119].mxu1  ;;  %2168 = vadd.xlane.f32.xlu1 %v2051_v16  ;;  %v1546_v35 = vpop.f32.mrb[123].mxu0  ;;  %v2056_v6 = vmul.f32 %v4065_v45, %v4065_v45 }
 0x309   :  { %4259 = vst [vmem:[#allocation14_spill] sm:$0xff] %v4071_v62  ;;  %1630 = vst [vmem:[#allocation2 + $0x1c0] sm:$0xff] %v1544_v24  ;;  %v1547_v20 = vadd.f32 %v3742_v32, %v1546_v35  ;;  %v4081_v31 = vadd.f32 %v3751_v2, %v1970_v58  ;;  %v2054_v16 = vmul.f32 %v4071_v62, %v4071_v62 }
 0x30a   :  { %4260 = vst [vmem:[#allocation15_spill] sm:$0xff] %v4075_v55  ;;  %1633 = vst [vmem:[#allocation2 + $0x1d8] sm:$0xff] %v1555_v12  ;;  %2178 = vadd.xlane.f32.xlu0 %v2056_v6  ;;  %v2057_v5 = vmul.f32 %v4075_v55, %v4075_v55 }
 0x30b   :  { %1631 = vst [vmem:[#allocation2 + $0x1c8] sm:$0xff] %v1547_v20  ;;  %v2055_v12 = vmul.f32 %v4081_v31, %v4081_v31 }
 0x30c   :  { %2180 = vadd.xlane.f32.xlu1 %v2057_v5 }
 0x30d   :  { %v2948_v33 = vpop.f32.mrb[124].mxu0  ;;  %v3028_v52 = vpop.f32.mrb[120].mxu1 }
 0x30e   :  { %v1568_v45 = vadd.f32 %v2948_v33, %v3742_v32  ;;  %v1983_v24 = vpop.f32.mrb[121].mxu1  ;;  %2174 = vadd.xlane.f32.xlu0 %v2054_v16  ;;  %v1559_v35 = vpop.f32.mrb[125].mxu0 }
 0x30f   :  { %v4091_v6 = vadd.f32 %v3751_v2, %v1983_v24  ;;  %v1560_v58 = vadd.f32 %v3742_v32, %v1559_v35  ;;  %v2949_v20 = vpop.f32.mrb[126].mxu0  ;;  %v3029_v5 = vpop.f32.mrb[122].mxu1 }
 0x310   :  { %1636 = vst [vmem:[#allocation2 + $0x1f0] sm:$0xff] %v1568_v45  ;;  %v1571_v62 = vadd.f32 %v2949_v20, %v3742_v32  ;;  %v1986_v55 = vpop.f32.mrb[123].mxu1  ;;  %2176 = vadd.xlane.f32.xlu1 %v2055_v12  ;;  %v1562_v30 = vpop.f32.mrb[127].mxu0 }
 0x311   :  { %1634 = vst [vmem:[#allocation2 + $0x1e0] sm:$0xff] %v1560_v58  ;;  %v4096_v16 = vadd.f32 %v3751_v2, %v1986_v55  ;;  %v1563_v33 = vadd.f32 %v3742_v32, %v1562_v30  ;;  %v2058_v24 = vmul.f32 %v4091_v6, %v4091_v6 }
 0x312   :  { %1637 = vst [vmem:[#allocation2 + $0x1f8] sm:$0xff] %v1571_v62 }
 0x313   :  { %4261 = vst [vmem:[#allocation16_spill] sm:$0xff] %v4096_v16  ;;  %1635 = vst [vmem:[#allocation2 + $0x1e8] sm:$0xff] %v1563_v33  ;;  %2182 = vadd.xlane.f32.xlu0 %v2058_v24  ;;  %v2059_v45 = vmul.f32 %v4096_v16, %v4096_v16 }
 0x315   :  { %2184 = vadd.xlane.f32.xlu1 %v2059_v45  ;;  %v2968_v35 = vpop.f32.mrb[128].mxu0  ;;  %v4120_v45 = vadd.f32 %v3029_v5, %v3751_v2 }
 0x316   :  { %v4104_v12 = vadd.f32 %v2968_v35, %v3751_v2  ;;  %v1743_v58 = vpop.f32.mrb[129].mxu0 }
 0x317   :  { %v4107_v55 = vadd.f32 %v3751_v2, %v1743_v58  ;;  %v2969_v20 = vpop.f32.mrb[130].mxu0  ;;  %4266 = vst [vmem:[#allocation21_spill] sm:$0xff] %v4120_v45  ;;  %v4125_v58 = vadd.f32 %v3028_v52, %v3751_v2 }
 0x318   :  { %4262 = vst [vmem:[#allocation17_spill] sm:$0xff] %v4104_v12  ;;  %v4110_v32 = vadd.f32 %v2969_v20, %v3751_v2  ;;  %v1746_v30 = vpop.f32.mrb[131].mxu0  ;;  %v2000_v62 = vmul.f32 %v4104_v12, %v4104_v12 }
 0x319   :  { %4263 = vst [vmem:[#allocation18_spill] sm:$0xff] %v4107_v55  ;;  %v4115_v33 = vadd.f32 %v3751_v2, %v1746_v30  ;;  %v1998_v24 = vmul.f32 %v4107_v55, %v4107_v55  ;;  %4267 = vst [vmem:[#allocation22_spill] sm:$0xff] %v4125_v58  ;;  %v2061_v30 = vmul.f32 %v4120_v45, %v4120_v45 }
 0x31a   :  { %4264 = vst [vmem:[#allocation19_spill] sm:$0xff] %v4110_v32  ;;  %2066 = vadd.xlane.f32.xlu1 %v2000_v62  ;;  %v2001_v35 = vmul.f32 %v4110_v32, %v4110_v32  ;;  %v2060_v62 = vmul.f32 %v4125_v58, %v4125_v58 }
 0x31b   :  { %4265 = vst [vmem:[#allocation20_spill] sm:$0xff] %v4115_v33  ;;  %2062 = vadd.xlane.f32.xlu0 %v1998_v24  ;;  %v1999_v20 = vmul.f32 %v4115_v33, %v4115_v33 }
 0x31e   :  { %2068 = vadd.xlane.f32.xlu1 %v2001_v35 }
 0x31f   :  { %2064 = vadd.xlane.f32.xlu0 %v1999_v20 }
 0x322   :  { %2188 = vadd.xlane.f32.xlu1 %v2061_v30 }
 0x323   :  { %2186 = vadd.xlane.f32.xlu0 %v2060_v62 }
 0x32f   :  { %v2075_v5 = vpop.xlane.xlu0 %2074 }
 0x330   :  { %v2196_v24 = vmax.f32 %v2075_v5, 1e-24 }
 0x331   :  { %v2077_v55 = vpop.xlane.xlu1 %2076 }
 0x332   :  { %3107 = vrsqrt.f32 %v2196_v24  ;;  %v2197_v32 = vmax.f32 %v2077_v55, 1e-24 }
 0x333   :  { %v2071_v2 = vpop.xlane.xlu0 %2070 }
 0x334   :  { %3109 = vrsqrt.f32 %v2197_v32  ;;  %v2194_v52 = vmax.f32 %v2071_v2, 1e-24 }
 0x335   :  { %v2073_v12 = vpop.xlane.xlu1 %2072 }
 0x336   :  { %3111 = vrsqrt.f32 %v2194_v52  ;;  %v2195_v35 = vmax.f32 %v2073_v12, 1e-24 }
 0x337   :  { %v2083_v20 = vpop.xlane.xlu0 %2082 }
 0x338   :  { %3113 = vrsqrt.f32 %v2195_v35  ;;  %v2200_v33 = vmax.f32 %v2083_v20, 1e-24 }
 0x339   :  { %v2085_v45 = vpop.xlane.xlu1 %2084 }
 0x33a   :  { %3115 = vrsqrt.f32 %v2200_v33  ;;  %v2201_v16 = vmax.f32 %v2085_v45, 1e-24 }
 0x33b   :  { %v2079_v58 = vpop.xlane.xlu0 %2078 }
 0x33c   :  { %v3108_v30 = vpop.eup %3107  ;;  %3117 = vrsqrt.f32 %v2201_v16  ;;  %v2198_v62 = vmax.f32 %v2079_v58, 1e-24 }
 0x33d   :  { %v2324_v5 = vmul.f32 %v3108_v30, %v3755_v41  ;;  %v2081_v24 = vpop.xlane.xlu1 %2080 }
 0x33e   :  { %v3110_v55 = vpop.eup %3109  ;;  %3119 = vrsqrt.f32 %v2198_v62  ;;  %v2199_v32 = vmax.f32 %v2081_v24, 1e-24 }
 0x33f   :  { %2388 = vst [vmem:[#allocation4 + $0x30] sm:$0xff] %v2324_v5  ;;  %v2325_v2 = vmul.f32 %v3110_v55, %v3763_v53  ;;  %v2091_v12 = vpop.xlane.xlu0 %2090 }
 0x340   :  { %v3112_v52 = vpop.eup %3111  ;;  %3121 = vrsqrt.f32 %v2199_v32  ;;  %v2204_v33 = vmax.f32 %v2091_v12, 1e-24 }
 0x341   :  { %2389 = vst [vmem:[#allocation4 + $0x38] sm:$0xff] %v2325_v2  ;;  %v2322_v16 = vmul.f32 %v3112_v52, %v3759_v50  ;;  %v2093_v45 = vpop.xlane.xlu1 %2092 }
 0x342   :  { %v3114_v58 = vpop.eup %3113  ;;  %3123 = vrsqrt.f32 %v2204_v33  ;;  %v2205_v41 = vmax.f32 %v2093_v45, 1e-24 }
 0x343   :  { %3246 = shalt.err (!%p3243_p4)
}
 0x344   :  { %s3247_s3 = scalar_lea.hbm %s4236_s9, 8192 }
 0x345   :  { %p3248_p5 = scmp.ne.s32.totalorder %s4236_s9, %s3247_s3  ;;  %p3251_p6 = scmp.lt.u32.totalorder %s3247_s3, %s4236_s9 }
 0x347   :  { %p3253_p7 = pnand %p3251_p6, %p3248_p5 }
 0x349   :  { %3256 = shalt.err (!%p3253_p7)
}
 0x34a   :  { %s3284_s27 = smov 128   ;;  %s3285_s28 = smov 8   ;;  %2386 = vst [vmem:[#allocation4 + $0x20] sm:$0xff] %v2322_v16  ;;  %v2323_v50 = vmul.f32 %v3114_v58, %v3769_v36  ;;  %v2087_v53 = vpop.xlane.xlu0 %2086  ;;  %v3116_v35 = vpop.eup %3115  ;;  %3125 = vrsqrt.f32 %v2205_v41 }
 0x34b   :  { %2457 = dma.vmem_to_hbm [thread:$0]  %s2452_s8, 8192, %s4236_s9, [#allocation3], %s3284_s27, %s3284_s27, %s3285_s28   ;;  %v2202_v20 = vmax.f32 %v2087_v53, 1e-24  ;;  %v2328_v30 = vmul.f32 %v3116_v35, %v3777_v61  ;;  %v2089_v62 = vpop.xlane.xlu1 %2088  ;;  %v3118_v5 = vpop.eup %3117 }
 0x34c   :  { %2387 = vst [vmem:[#allocation4 + $0x28] sm:$0xff] %v2323_v50  ;;  %v2203_v24 = vmax.f32 %v2089_v62, 1e-24  ;;  %v2329_v55 = vmul.f32 %v3118_v5, %v3787_v9  ;;  %v3120_v2 = vpop.eup %3119  ;;  %s3286_s9 = smov [#allocation4]  }
 0x34d   :  { %3127 = vrsqrt.f32 %v2202_v20  ;;  %2392 = vst [vmem:[#allocation4 + $0x50] sm:$0xff] %v2328_v30  ;;  %v2326_v36 = vmul.f32 %v3120_v2, %v3783_v7  ;;  %v3122_v33 = vpop.eup %3121  ;;  %s2463_s11 = sshll.u32 %s3286_s9, 4  ;;  %s2464_s11 = int_to_ptr.vmem [resolvable:$true] %s2463_s11 }
 0x34e   :  { %v2099_v32 = vpop.xlane.xlu0 %2098  ;;  %3129 = vrsqrt.f32 %v2203_v24  ;;  %2393 = vst [vmem:[#allocation4 + $0x58] sm:$0xff] %v2329_v55  ;;  %v2327_v61 = vmul.f32 %v3122_v33, %v3793_v14  ;;  %v3124_v58 = vpop.eup %3123  ;;  %s3257_s12 = scalar_lea.vmem %s2464_s11, 8192  ;;  %p3262_p9 = scmp.lt.s32.totalorder %s2464_s11, %s2464_s11 }
 0x34f   :  { %v2208_v12 = vmax.f32 %v2099_v32, 1e-24  ;;  %v2101_v52 = vpop.xlane.xlu1 %2100  ;;  %2390 = vst [vmem:[#allocation4 + $0x40] sm:$0xff] %v2326_v36  ;;  %v2332_v9 = vmul.f32 %v3124_v58, %v3801_v21  ;;  %p3258_p8 = scmp.ne.s32.totalorder %s2464_s11, %s3257_s12  ;;  %p3263_p10 = scmp.lt.s32.totalorder %s3257_s12, %s3257_s12 }
 0x350   :  { %v2209_v16 = vmax.f32 %v2101_v52, 1e-24  ;;  %2391 = vst [vmem:[#allocation4 + $0x48] sm:$0xff] %v2327_v61 }
 0x351   :  { %3131 = vrsqrt.f32 %v2208_v12  ;;  %2396 = vst [vmem:[#allocation4 + $0x70] sm:$0xff] %v2332_v9  ;;  %p3264_p11 = por %p3263_p10, %p3262_p9 }
 0x352   :  { %v2095_v45 = vpop.xlane.xlu0 %2094  ;;  %3133 = vrsqrt.f32 %v2209_v16 }
 0x353   :  { %v2206_v41 = vmax.f32 %v2095_v45, 1e-24  ;;  %v2097_v50 = vpop.xlane.xlu1 %2096  ;;  %p3265_p12 = pnand %p3264_p11, %p3258_p8 }
 0x354   :  { %v3126_v53 = vpop.eup %3125  ;;  %v2207_v35 = vmax.f32 %v2097_v50, 1e-24 }
 0x355   :  { %3135 = vrsqrt.f32 %v2206_v41  ;;  %v2333_v7 = vmul.f32 %v3126_v53, %v3811_v29 }
 0x356   :  { %v2107_v20 = vpop.xlane.xlu0 %2106  ;;  %3137 = vrsqrt.f32 %v2207_v35 }
 0x357   :  { %v3128_v30 = vpop.eup %3127  ;;  %v2212_v62 = vmax.f32 %v2107_v20, 1e-24  ;;  %2397 = vst [vmem:[#allocation4 + $0x78] sm:$0xff] %v2333_v7  ;;  %v2109_v5 = vpop.xlane.xlu1 %2108 }
 0x358   :  { %v2330_v14 = vmul.f32 %v3128_v30, %v3807_v1  ;;  %v3130_v24 = vpop.eup %3129  ;;  %v2213_v55 = vmax.f32 %v2109_v5, 1e-24 }
 0x359   :  { %3139 = vrsqrt.f32 %v2212_v62  ;;  %v2331_v21 = vmul.f32 %v3130_v24, %v3817_v34 }
 0x35a   :  { %2394 = vst [vmem:[#allocation4 + $0x60] sm:$0xff] %v2330_v14  ;;  %v2103_v32 = vpop.xlane.xlu0 %2102  ;;  %3141 = vrsqrt.f32 %v2213_v55 }
 0x35b   :  { %v3132_v2 = vpop.eup %3131  ;;  %v2210_v12 = vmax.f32 %v2103_v32, 1e-24  ;;  %2395 = vst [vmem:[#allocation4 + $0x68] sm:$0xff] %v2331_v21  ;;  %v2105_v36 = vpop.xlane.xlu1 %2104 }
 0x35c   :  { %v2336_v29 = vmul.f32 %v3132_v2, %v3825_v39  ;;  %v3134_v52 = vpop.eup %3133  ;;  %v2211_v33 = vmax.f32 %v2105_v36, 1e-24 }
 0x35d   :  { %3143 = vrsqrt.f32 %v2210_v12  ;;  %v2337_v1 = vmul.f32 %v3134_v52, %v3835_v54 }
 0x35e   :  { %2400 = vst [vmem:[#allocation4 + $0x90] sm:$0xff] %v2336_v29  ;;  %v2115_v16 = vpop.xlane.xlu0 %2114  ;;  %3145 = vrsqrt.f32 %v2211_v33 }
 0x35f   :  { %v3136_v61 = vpop.eup %3135  ;;  %v2216_v45 = vmax.f32 %v2115_v16, 1e-24  ;;  %2401 = vst [vmem:[#allocation4 + $0x98] sm:$0xff] %v2337_v1  ;;  %v2117_v58 = vpop.xlane.xlu1 %2116 }
 0x360   :  { %v2334_v34 = vmul.f32 %v3136_v61, %v3831_v49  ;;  %v3138_v41 = vpop.eup %3137  ;;  %v2217_v9 = vmax.f32 %v2117_v58, 1e-24 }
 0x361   :  { %3147 = vrsqrt.f32 %v2216_v45  ;;  %v2335_v39 = vmul.f32 %v3138_v41, %v3841_v57 }
 0x362   :  { %2398 = vst [vmem:[#allocation4 + $0x80] sm:$0xff] %v2334_v34  ;;  %v2111_v50 = vpop.xlane.xlu0 %2110  ;;  %3149 = vrsqrt.f32 %v2217_v9 }
 0x363   :  { %v3140_v53 = vpop.eup %3139  ;;  %v2214_v35 = vmax.f32 %v2111_v50, 1e-24  ;;  %2399 = vst [vmem:[#allocation4 + $0x88] sm:$0xff] %v2335_v39  ;;  %v2113_v7 = vpop.xlane.xlu1 %2112 }
 0x364   :  { %v2340_v54 = vmul.f32 %v3140_v53, %v3849_v4  ;;  %v3142_v20 = vpop.eup %3141  ;;  %v2215_v30 = vmax.f32 %v2113_v7, 1e-24 }
 0x365   :  { %3151 = vrsqrt.f32 %v2214_v35  ;;  %v2341_v49 = vmul.f32 %v3142_v20, %v3859_v15 }
 0x366   :  { %2404 = vst [vmem:[#allocation4 + $0xb0] sm:$0xff] %v2340_v54  ;;  %v2123_v62 = vpop.xlane.xlu0 %2122  ;;  %3153 = vrsqrt.f32 %v2215_v30 }
 0x367   :  { %v3144_v14 = vpop.eup %3143  ;;  %v2220_v5 = vmax.f32 %v2123_v62, 1e-24  ;;  %2405 = vst [vmem:[#allocation4 + $0xb8] sm:$0xff] %v2341_v49  ;;  %v2125_v24 = vpop.xlane.xlu1 %2124 }
 0x368   :  { %v2338_v57 = vmul.f32 %v3144_v14, %v3855_v63  ;;  %v3146_v55 = vpop.eup %3145  ;;  %v2221_v21 = vmax.f32 %v2125_v24, 1e-24 }
 0x369   :  { %3155 = vrsqrt.f32 %v2220_v5  ;;  %v2339_v4 = vmul.f32 %v3146_v55, %v3865_v22 }
 0x36a   :  { %2402 = vst [vmem:[#allocation4 + $0xa0] sm:$0xff] %v2338_v57  ;;  %v2119_v32 = vpop.xlane.xlu0 %2118  ;;  %3157 = vrsqrt.f32 %v2221_v21 }
 0x36b   :  { %v3148_v2 = vpop.eup %3147  ;;  %v2218_v12 = vmax.f32 %v2119_v32, 1e-24  ;;  %2403 = vst [vmem:[#allocation4 + $0xa8] sm:$0xff] %v2339_v4  ;;  %v2121_v29 = vpop.xlane.xlu1 %2120 }
 0x36c   :  { %v2344_v15 = vmul.f32 %v3148_v2, %v3873_v27  ;;  %v3150_v36 = vpop.eup %3149  ;;  %v2219_v52 = vmax.f32 %v2121_v29, 1e-24 }
 0x36d   :  { %3159 = vrsqrt.f32 %v2218_v12  ;;  %v2345_v63 = vmul.f32 %v3150_v36, %v3883_v3 }
 0x36e   :  { %2408 = vst [vmem:[#allocation4 + $0xd0] sm:$0xff] %v2344_v15  ;;  %v2131_v33 = vpop.xlane.xlu0 %2130  ;;  %3161 = vrsqrt.f32 %v2219_v52 }
 0x36f   :  { %v3152_v1 = vpop.eup %3151  ;;  %v2224_v16 = vmax.f32 %v2131_v33, 1e-24  ;;  %2409 = vst [vmem:[#allocation4 + $0xd8] sm:$0xff] %v2345_v63  ;;  %v2133_v61 = vpop.xlane.xlu1 %2132 }
 0x370   :  { %v2342_v22 = vmul.f32 %v3152_v1, %v3879_v38  ;;  %v3154_v45 = vpop.eup %3153  ;;  %v2225_v34 = vmax.f32 %v2133_v61, 1e-24 }
 0x371   :  { %3163 = vrsqrt.f32 %v2224_v16  ;;  %v2343_v27 = vmul.f32 %v3154_v45, %v3889_v47 }
 0x372   :  { %2406 = vst [vmem:[#allocation4 + $0xc0] sm:$0xff] %v2342_v22  ;;  %v2127_v58 = vpop.xlane.xlu0 %2126  ;;  %3165 = vrsqrt.f32 %v2225_v34 }
 0x373   :  { %v3156_v41 = vpop.eup %3155  ;;  %v2222_v9 = vmax.f32 %v2127_v58, 1e-24  ;;  %2407 = vst [vmem:[#allocation4 + $0xc8] sm:$0xff] %v2343_v27  ;;  %v2129_v39 = vpop.xlane.xlu1 %2128 }
 0x374   :  { %v2348_v3 = vmul.f32 %v3156_v41, %v3897_v44  ;;  %v3158_v50 = vpop.eup %3157  ;;  %v2223_v53 = vmax.f32 %v2129_v39, 1e-24 }
 0x375   :  { %3167 = vrsqrt.f32 %v2222_v9  ;;  %v2349_v38 = vmul.f32 %v3158_v50, %v3907_v8 }
 0x376   :  { %2412 = vst [vmem:[#allocation4 + $0xf0] sm:$0xff] %v2348_v3  ;;  %v2139_v35 = vpop.xlane.xlu0 %2138  ;;  %3169 = vrsqrt.f32 %v2223_v53 }
 0x377   :  { %v3160_v54 = vpop.eup %3159  ;;  %v2228_v7 = vmax.f32 %v2139_v35, 1e-24  ;;  %2413 = vst [vmem:[#allocation4 + $0xf8] sm:$0xff] %v2349_v38  ;;  %v2141_v20 = vpop.xlane.xlu1 %2140 }
 0x378   :  { %v2346_v47 = vmul.f32 %v3160_v54, %v3903_v46  ;;  %v3162_v30 = vpop.eup %3161  ;;  %v2229_v49 = vmax.f32 %v2141_v20, 1e-24 }
 0x379   :  { %3171 = vrsqrt.f32 %v2228_v7  ;;  %v2347_v44 = vmul.f32 %v3162_v30, %v3913_v17 }
 0x37a   :  { %2410 = vst [vmem:[#allocation4 + $0xe0] sm:$0xff] %v2346_v47  ;;  %v2135_v62 = vpop.xlane.xlu0 %2134  ;;  %3173 = vrsqrt.f32 %v2229_v49 }
 0x37b   :  { %v3164_v14 = vpop.eup %3163  ;;  %v2226_v5 = vmax.f32 %v2135_v62, 1e-24  ;;  %2411 = vst [vmem:[#allocation4 + $0xe8] sm:$0xff] %v2347_v44  ;;  %v2137_v57 = vpop.xlane.xlu1 %2136 }
 0x37c   :  { %v2352_v8 = vmul.f32 %v3164_v14, %v3921_v25  ;;  %v3166_v24 = vpop.eup %3165  ;;  %v2227_v55 = vmax.f32 %v2137_v57, 1e-24 }
 0x37d   :  { %3175 = vrsqrt.f32 %v2226_v5  ;;  %v2353_v46 = vmul.f32 %v3166_v24, %v3931_v40 }
 0x37e   :  { %2416 = vst [vmem:[#allocation4 + $0x110] sm:$0xff] %v2352_v8  ;;  %v2147_v21 = vpop.xlane.xlu0 %2146  ;;  %3177 = vrsqrt.f32 %v2227_v55 }
 0x37f   :  { %v3168_v4 = vpop.eup %3167  ;;  %v2232_v32 = vmax.f32 %v2147_v21, 1e-24  ;;  %2417 = vst [vmem:[#allocation4 + $0x118] sm:$0xff] %v2353_v46  ;;  %v2149_v2 = vpop.xlane.xlu1 %2148 }
 0x380   :  { %v2350_v17 = vmul.f32 %v3168_v4, %v3927_v37  ;;  %v3170_v12 = vpop.eup %3169  ;;  %v2233_v15 = vmax.f32 %v2149_v2, 1e-24 }
 0x381   :  { %3179 = vrsqrt.f32 %v2232_v32  ;;  %v2351_v25 = vmul.f32 %v3170_v12, %v3937_v51 }
 0x382   :  { %2414 = vst [vmem:[#allocation4 + $0x100] sm:$0xff] %v2350_v17  ;;  %v2143_v29 = vpop.xlane.xlu0 %2142  ;;  %3181 = vrsqrt.f32 %v2233_v15 }
 0x383   :  { %v3172_v36 = vpop.eup %3171  ;;  %v2230_v52 = vmax.f32 %v2143_v29, 1e-24  ;;  %2415 = vst [vmem:[#allocation4 + $0x108] sm:$0xff] %v2351_v25  ;;  %v2145_v63 = vpop.xlane.xlu1 %2144 }
 0x384   :  { %v2356_v40 = vmul.f32 %v3172_v36, %v3945_v60  ;;  %v3174_v33 = vpop.eup %3173  ;;  %v2231_v1 = vmax.f32 %v2145_v63, 1e-24 }
 0x385   :  { %3183 = vrsqrt.f32 %v2230_v52  ;;  %v2357_v37 = vmul.f32 %v3174_v33, %v3955_v18 }
 0x386   :  { %2420 = vst [vmem:[#allocation4 + $0x130] sm:$0xff] %v2356_v40  ;;  %v2155_v16 = vpop.xlane.xlu0 %2154  ;;  %3185 = vrsqrt.f32 %v2231_v1 }
 0x387   :  { %v3176_v22 = vpop.eup %3175  ;;  %v2236_v61 = vmax.f32 %v2155_v16, 1e-24  ;;  %2421 = vst [vmem:[#allocation4 + $0x138] sm:$0xff] %v2357_v37  ;;  %v2157_v45 = vpop.xlane.xlu1 %2156 }
 0x388   :  { %v2354_v51 = vmul.f32 %v3176_v22, %v3951_v13  ;;  %v3178_v34 = vpop.eup %3177  ;;  %v2237_v27 = vmax.f32 %v2157_v45, 1e-24 }
 0x389   :  { %3187 = vrsqrt.f32 %v2236_v61  ;;  %v2355_v60 = vmul.f32 %v3178_v34, %v3961_v26 }
 0x38a   :  { %2418 = vst [vmem:[#allocation4 + $0x120] sm:$0xff] %v2354_v51  ;;  %v2151_v58 = vpop.xlane.xlu0 %2150  ;;  %3189 = vrsqrt.f32 %v2237_v27 }
 0x38b   :  { %v3180_v41 = vpop.eup %3179  ;;  %v2234_v9 = vmax.f32 %v2151_v58, 1e-24  ;;  %2419 = vst [vmem:[#allocation4 + $0x128] sm:$0xff] %v2355_v60  ;;  %v2153_v3 = vpop.xlane.xlu1 %2152  ;;  %v4271_v60 = vld [vmem:[#allocation10_spill] sm:$0xff] }
 0x38c   :  { %v2360_v18 = vmul.f32 %v3180_v41, %v3969_v10  ;;  %v3182_v39 = vpop.eup %3181  ;;  %v2235_v50 = vmax.f32 %v2153_v3, 1e-24  ;;  %v4272_v3 = vld [vmem:[#allocation12_spill] sm:$0xff] }
 0x38d   :  { %3191 = vrsqrt.f32 %v2234_v9  ;;  %v2361_v13 = vmul.f32 %v3182_v39, %v3979_v59 }
 0x38e   :  { %2424 = vst [vmem:[#allocation4 + $0x150] sm:$0xff] %v2360_v18  ;;  %v2163_v53 = vpop.xlane.xlu0 %2162  ;;  %3193 = vrsqrt.f32 %v2235_v50 }
 0x38f   :  { %v3184_v38 = vpop.eup %3183  ;;  %v2240_v35 = vmax.f32 %v2163_v53, 1e-24  ;;  %2425 = vst [vmem:[#allocation4 + $0x158] sm:$0xff] %v2361_v13  ;;  %v2165_v54 = vpop.xlane.xlu1 %2164  ;;  %v4273_v53 = vld [vmem:[#allocation13_spill] sm:$0xff] }
 0x390   :  { %v2358_v26 = vmul.f32 %v3184_v38, %v3975_v56  ;;  %v3186_v7 = vpop.eup %3185  ;;  %v2241_v47 = vmax.f32 %v2165_v54, 1e-24 }
 0x391   :  { %3195 = vrsqrt.f32 %v2240_v35  ;;  %v2359_v10 = vmul.f32 %v3186_v7, %v3985_v11 }
 0x392   :  { %2422 = vst [vmem:[#allocation4 + $0x140] sm:$0xff] %v2358_v26  ;;  %v2159_v20 = vpop.xlane.xlu0 %2158  ;;  %3197 = vrsqrt.f32 %v2241_v47  ;;  %v4274_v26 = vld [vmem:[#allocation15_spill] sm:$0xff] }
 0x393   :  { %v3188_v30 = vpop.eup %3187  ;;  %v2238_v49 = vmax.f32 %v2159_v20, 1e-24  ;;  %2423 = vst [vmem:[#allocation4 + $0x148] sm:$0xff] %v2359_v10  ;;  %v2161_v44 = vpop.xlane.xlu1 %2160 }
 0x394   :  { %v2364_v59 = vmul.f32 %v3188_v30, %v3993_v42  ;;  %v3190_v62 = vpop.eup %3189  ;;  %v2239_v14 = vmax.f32 %v2161_v44, 1e-24  ;;  %v4275_v30 = vld [vmem:[#allocation14_spill] sm:$0xff] }
 0x395   :  { %3199 = vrsqrt.f32 %v2238_v49  ;;  %v2365_v56 = vmul.f32 %v3190_v62, %v4003_v48 }
 0x396   :  { %2428 = vst [vmem:[#allocation4 + $0x170] sm:$0xff] %v2364_v59  ;;  %v2171_v5 = vpop.xlane.xlu0 %2170  ;;  %3201 = vrsqrt.f32 %v2239_v14 }
 0x397   :  { %v3192_v8 = vpop.eup %3191  ;;  %v2244_v57 = vmax.f32 %v2171_v5, 1e-24  ;;  %2429 = vst [vmem:[#allocation4 + $0x178] sm:$0xff] %v2365_v56  ;;  %v2173_v24 = vpop.xlane.xlu1 %2172 }
 0x398   :  { %v2362_v11 = vmul.f32 %v3192_v8, %v3999_v43  ;;  %v3194_v55 = vpop.eup %3193  ;;  %v2245_v46 = vmax.f32 %v2173_v24, 1e-24 }
 0x399   :  { %3203 = vrsqrt.f32 %v2244_v57  ;;  %v2363_v42 = vmul.f32 %v3194_v55, %v4009_v0 }
 0x39a   :  { %2426 = vst [vmem:[#allocation4 + $0x160] sm:$0xff] %v2362_v11  ;;  %v2167_v21 = vpop.xlane.xlu0 %2166  ;;  %3205 = vrsqrt.f32 %v2245_v46  ;;  %v4276_v46 = vld [vmem:[#allocation16_spill] sm:$0xff] }
 0x39b   :  { %v3196_v4 = vpop.eup %3195  ;;  %v2242_v32 = vmax.f32 %v2167_v21, 1e-24  ;;  %2427 = vst [vmem:[#allocation4 + $0x168] sm:$0xff] %v2363_v42  ;;  %v2169_v17 = vpop.xlane.xlu1 %2168 }
 0x39c   :  { %v2368_v48 = vmul.f32 %v3196_v4, %v4017_v23  ;;  %v3198_v2 = vpop.eup %3197  ;;  %v2243_v12 = vmax.f32 %v2169_v17, 1e-24  ;;  %v4268_v23 = vld [vmem:[#allocation8_spill] sm:$0xff]  ;;  %v4277_v17 = vld [vmem:[#allocation17_spill] sm:$0xff] }
 0x39d   :  { %3207 = vrsqrt.f32 %v2242_v32  ;;  %v2369_v43 = vmul.f32 %v3198_v2, %v4027_v28  ;;  %v4269_v28 = vld [vmem:[#allocation9_spill] sm:$0xff] }
 0x39e   :  { %2432 = vst [vmem:[#allocation4 + $0x190] sm:$0xff] %v2368_v48  ;;  %v2179_v15 = vpop.xlane.xlu0 %2178  ;;  %3209 = vrsqrt.f32 %v2243_v12  ;;  %v4278_v12 = vld [vmem:[#allocation18_spill] sm:$0xff] }
 0x39f   :  { %v3200_v25 = vpop.eup %3199  ;;  %v2248_v29 = vmax.f32 %v2179_v15, 1e-24  ;;  %2433 = vst [vmem:[#allocation4 + $0x198] sm:$0xff] %v2369_v43  ;;  %v2181_v36 = vpop.xlane.xlu1 %2180 }
 0x3a0   :  { %v2366_v0 = vmul.f32 %v3200_v25, %v4023_v19  ;;  %v3202_v52 = vpop.eup %3201  ;;  %v2249_v40 = vmax.f32 %v2181_v36, 1e-24  ;;  %v4270_v19 = vld [vmem:[#allocation11_spill] sm:$0xff] }
 0x3a1   :  { %3211 = vrsqrt.f32 %v2248_v29  ;;  %v2367_v63 = vmul.f32 %v3202_v52, %v4268_v23  ;;  %v4279_v25 = vld [vmem:[#allocation19_spill] sm:$0xff]  ;;  %v4281_v23 = vld [vmem:[#allocation21_spill] sm:$0xff] }
 0x3a2   :  { %2430 = vst [vmem:[#allocation4 + $0x180] sm:$0xff] %v2366_v0  ;;  %v2175_v33 = vpop.xlane.xlu0 %2174  ;;  %3213 = vrsqrt.f32 %v2249_v40  ;;  %v4280_v0 = vld [vmem:[#allocation20_spill] sm:$0xff] }
 0x3a3   :  { %v3204_v1 = vpop.eup %3203  ;;  %v2246_v37 = vmax.f32 %v2175_v33, 1e-24  ;;  %2431 = vst [vmem:[#allocation4 + $0x188] sm:$0xff] %v2367_v63  ;;  %v2177_v22 = vpop.xlane.xlu1 %2176  ;;  %v4282_v33 = vld [vmem:[#allocation22_spill] sm:$0xff] }
 0x3a4   :  { %v2372_v16 = vmul.f32 %v3204_v1, %v4269_v28  ;;  %v3206_v61 = vpop.eup %3205  ;;  %v2247_v51 = vmax.f32 %v2177_v22, 1e-24 }
 0x3a5   :  { %3215 = vrsqrt.f32 %v2246_v37  ;;  %v2373_v45 = vmul.f32 %v3206_v61, %v4270_v19 }
 0x3a6   :  { %2436 = vst [vmem:[#allocation4 + $0x1b0] sm:$0xff] %v2372_v16  ;;  %3217 = vrsqrt.f32 %v2247_v51  ;;  %v2183_v27 = vpop.xlane.xlu0 %2182 }
 0x3a7   :  { %v3208_v34 = vpop.eup %3207  ;;  %2437 = vst [vmem:[#allocation4 + $0x1b8] sm:$0xff] %v2373_v45  ;;  %v2250_v41 = vmax.f32 %v2183_v27, 1e-24  ;;  %v2185_v18 = vpop.xlane.xlu1 %2184 }
 0x3a8   :  { %v2370_v58 = vmul.f32 %v3208_v34, %v4271_v60  ;;  %v3210_v9 = vpop.eup %3209  ;;  %v2251_v50 = vmax.f32 %v2185_v18, 1e-24 }
 0x3a9   :  { %v2371_v39 = vmul.f32 %v3210_v9, %v4272_v3  ;;  %3219 = vrsqrt.f32 %v2250_v41 }
 0x3aa   :  { %2434 = vst [vmem:[#allocation4 + $0x1a0] sm:$0xff] %v2370_v58  ;;  %3221 = vrsqrt.f32 %v2251_v50  ;;  %v2063_v20 = vpop.xlane.xlu0 %2062 }
 0x3ab   :  { %v3212_v13 = vpop.eup %3211  ;;  %2435 = vst [vmem:[#allocation4 + $0x1a8] sm:$0xff] %v2371_v39  ;;  %v2067_v7 = vpop.xlane.xlu1 %2066  ;;  %v2190_v59 = vmax.f32 %v2063_v20, 1e-24 }
 0x3ac   :  { %v2376_v38 = vmul.f32 %v3212_v13, %v4273_v53  ;;  %v3214_v35 = vpop.eup %3213  ;;  %v2192_v10 = vmax.f32 %v2067_v7, 1e-24 }
 0x3ad   :  { %v2377_v54 = vmul.f32 %v3214_v35, %v4274_v26 }
 0x3ae   :  { %2440 = vst [vmem:[#allocation4 + $0x1d0] sm:$0xff] %v2376_v38  ;;  %3223 = vrsqrt.f32 %v2192_v10  ;;  %v2065_v5 = vpop.xlane.xlu0 %2064 }
 0x3af   :  { %v3216_v47 = vpop.eup %3215  ;;  %2441 = vst [vmem:[#allocation4 + $0x1d8] sm:$0xff] %v2377_v54  ;;  %3225 = vrsqrt.f32 %v2190_v59  ;;  %v2069_v14 = vpop.xlane.xlu1 %2068  ;;  %v2191_v57 = vmax.f32 %v2065_v5, 1e-24 }
 0x3b0   :  { %v2374_v49 = vmul.f32 %v3216_v47, %v4275_v30  ;;  %v3218_v44 = vpop.eup %3217  ;;  %v2193_v56 = vmax.f32 %v2069_v14, 1e-24 }
 0x3b1   :  { %v2375_v62 = vmul.f32 %v3218_v44, %v4081_v31 }
 0x3b2   :  { %2438 = vst [vmem:[#allocation4 + $0x1c0] sm:$0xff] %v2374_v49  ;;  %3227 = vrsqrt.f32 %v2193_v56  ;;  %v2187_v4 = vpop.xlane.xlu0 %2186 }
 0x3b3   :  { %v3220_v8 = vpop.eup %3219  ;;  %2439 = vst [vmem:[#allocation4 + $0x1c8] sm:$0xff] %v2375_v62  ;;  %3229 = vrsqrt.f32 %v2191_v57  ;;  %v2189_v55 = vpop.xlane.xlu1 %2188  ;;  %v2252_v32 = vmax.f32 %v2187_v4, 1e-24 }
 0x3b4   :  { %v2378_v11 = vmul.f32 %v3220_v8, %v4091_v6  ;;  %v3222_v24 = vpop.eup %3221  ;;  %v2253_v21 = vmax.f32 %v2189_v55, 1e-24 }
 0x3b5   :  { %v2379_v42 = vmul.f32 %v3222_v24, %v4276_v46 }
 0x3b6   :  { %2442 = vst [vmem:[#allocation4 + $0x1e0] sm:$0xff] %v2378_v11  ;;  %3231 = vrsqrt.f32 %v2253_v21 }
 0x3b7   :  { %2443 = vst [vmem:[#allocation4 + $0x1e8] sm:$0xff] %v2379_v42  ;;  %3233 = vrsqrt.f32 %v2252_v32 }
 0x3b8   :  { %v3224_v31 = vpop.eup %3223 }
 0x3b9   :  { %v3226_v48 = vpop.eup %3225  ;;  %v2320_v2 = vmul.f32 %v3224_v31, %v4277_v17 }
 0x3ba   :  { %v2318_v43 = vmul.f32 %v3226_v48, %v4278_v12 }
 0x3bb   :  { %2384 = vst [vmem:[#allocation4 + $0x10] sm:$0xff] %v2320_v2 }
 0x3bc   :  { %v3228_v6 = vpop.eup %3227  ;;  %2382 = vst [vmem:[#allocation4] sm:$0xff] %v2318_v43 }
 0x3bd   :  { %v3230_v15 = vpop.eup %3229  ;;  %v2321_v29 = vmul.f32 %v3228_v6, %v4279_v25 }
 0x3be   :  { %v2319_v36 = vmul.f32 %v3230_v15, %v4280_v0 }
 0x3bf   :  { %2385 = vst [vmem:[#allocation4 + $0x18] sm:$0xff] %v2321_v29 }
 0x3c0   :  { %v3232_v52 = vpop.eup %3231  ;;  %2383 = vst [vmem:[#allocation4 + $0x8] sm:$0xff] %v2319_v36 }
 0x3c1   :  { %v3234_v40 = vpop.eup %3233  ;;  %v2381_v63 = vmul.f32 %v3232_v52, %v4281_v23 }
 0x3c2   :  { %v2380_v1 = vmul.f32 %v3234_v40, %v4282_v33 }
 0x3c3   :  { %2445 = vst [vmem:[#allocation4 + $0x1f8] sm:$0xff] %v2381_v63 }
 0x3c4   :  { %2444 = vst [vmem:[#allocation4 + $0x1f0] sm:$0xff] %v2380_v1 }
 0x3c5   :  { %3268 = shalt.err (!%p3265_p12)
}
 0x3c6   :  { %s3269_s14 = scalar_lea.hbm %s4237_s10, 8192 }
 0x3c7   :  { %p3270_p13 = scmp.ne.s32.totalorder %s4237_s10, %s3269_s14  ;;  %p3273_p0 = scmp.lt.u32.totalorder %s3269_s14, %s4237_s10 }
 0x3c9   :  { %p3275_p1 = pnand %p3273_p0, %p3270_p13 }
 0x3cb   :  { %3278 = shalt.err (!%p3275_p1)
}
 0x3cc   :  { %2469 = dma.vmem_to_hbm [thread:$0]  %s2464_s11, 8192, %s4237_s10, [#allocation5], %s3284_s27, %s3284_s27, %s3285_s28  }
 0x3cd   :  { %3279 = dma.done.wait [#allocation3], 8192  }
 0x3ce   :  { %3280 = vsyncadd [#allocation3], 4294959104 }
 0x3cf   :  { %3281 = dma.done.wait [#allocation5], 8192  }
 0x3d0   :  { %3282 = vsyncadd [#allocation5], 4294959104 }
 0x3d1   :  { %2476 = vsyncpa [#allocation3], 1 }
 0x3d2   :  { %2477 = vsyncpa [#allocation5], 1 }

</bundles_post_ra>
